<compile_context>
chip_gen: v7x
topology: tpu7x:2x2x1
jax: 0.10.0
libtpu: 0.0.40
codegen_flags: <defaults>
</compile_context>

<pallas_src>
import functools
import math

import jax
import jax.numpy as jnp
from jax.experimental import pallas as pl
from jax.experimental.pallas import tpu as pltpu

N = 24                       # input feature size, as in the PyTorch module
_PACK = 16                   # logical rows folded into one lane-dense packed row
_INV_2E = 1.0 / (2.0 * math.e)
_HP = jax.lax.Precision.HIGHEST
_TBP_MAX = 2048              # max packed rows per grid step (= 32768 logical rows)


def _round_up(v, m):
    return (v + m - 1) // m * m


def _matmul_precision():
    """HIGHEST on v6e/v7x; HIGH on v5e (keeps the packed matmul memory-bound there)."""
    try:
        kind = jax.devices()[0].device_kind.lower()
    except Exception:
        return jax.lax.Precision.HIGHEST
    if ("v5 lite" in kind) or ("v5e" in kind) or ("v5lite" in kind) or ("v4 lite" in kind):
        return jax.lax.Precision.HIGH
    return jax.lax.Precision.HIGHEST


def encoder_kernel(x_ref, w_ref, b_ref, mu_ref, sigma_ref, *, zp, precision):
    # One MXU matmul feeds BOTH heads: y = x_packed @ [W_mu_blockdiag | W_sig_blockdiag] + b.
    y = jnp.dot(x_ref[...], w_ref[...],
                preferred_element_type=jnp.float32,
                precision=precision) + b_ref[...]            # (TBP, 2*zp)
    # Static, lane-tile-aligned halves (zp = 128 for z_dim = 8): each head applies only
    # its own activation and is stored as its own fully lane-dense output.
    mu_ref[...] = jnp.tanh(y[:, :zp])
    sigma_ref[...] = _INV_2E * jnp.exp(jax.nn.sigmoid(y[:, zp:]))


def precompose_params(params, pack=_PACK):
    """Fold the four Linear layers into one block-diagonal fused (pack*N, 2*pack*Z)
    weight and a (1, 2*pack*Z) bias (mu columns first, then sigma columns)."""
    w1, b1, w21, b21, w31, b31, w22, b22 = params
    w_mu = jnp.dot(jnp.dot(w1, w21, precision=_HP), w31, precision=_HP)        # (N, Z)
    b_mu = (jnp.dot(jnp.dot(b1, w21, precision=_HP), w31, precision=_HP)
            + jnp.dot(b21, w31, precision=_HP) + b31)                          # (1, Z)
    w_sg = jnp.dot(w1, w22, precision=_HP)                                     # (N, Z)
    b_sg = jnp.dot(b1, w22, precision=_HP) + b22                               # (1, Z)

    eye = jnp.eye(pack, dtype=jnp.float32)
    w_fused = jnp.concatenate([jnp.kron(eye, w_mu), jnp.kron(eye, w_sg)], axis=1)
    b_fused = jnp.concatenate([jnp.tile(b_mu, (1, pack)), jnp.tile(b_sg, (1, pack))],
                              axis=1)
    return w_fused, b_fused                                                    # (P*N, 2*P*Z), (1, 2*P*Z)


def encoder_forward(x, fused_params):
    """x: any shape whose total size is divisible by N. Returns (mu, sigma)."""
    w_fused, b_fused = fused_params
    zp2 = w_fused.shape[1]          # 2 * PACK * z_dim
    zp = zp2 // 2                   # PACK * z_dim  (= 128 when z_dim == 8)
    z_dim = zp // _PACK
    pn = _PACK * N                  # 384 packed input lanes

    x2d = x.reshape(-1, N).astype(jnp.float32)
    B = x2d.shape[0]

    # Pad only up to a multiple of the pack factor (<= 15 rows); when B % 16 == 0
    # (the common case and the tests' fast path) there is NO pad and NO final slice.
    Bp = _round_up(B, _PACK)
    if Bp != B:
        x2d = jnp.pad(x2d, ((0, Bp - B), (0, 0)))
    bp = Bp // _PACK
    xp = x2d.reshape(bp, pn)        # contiguous row-major reshape: free

    # Batch tile in packed rows: as large as comfortably fits VMEM, and >= 2 grid steps
    # whenever there is enough work so v7x's two TensorCores both get tiles.
    if bp <= 8:
        tbp = bp                    # block extent == full array extent (always legal)
    else:
        tbp = min(_TBP_MAX, _round_up(pl.cdiv(bp, 2), 8))
    grid = (pl.cdiv(bp, tbp),)      # ragged last block is masked by Pallas (no jnp.pad)

    mu_p, sg_p = pl.pallas_call(
        functools.partial(encoder_kernel, zp=zp, precision=_matmul_precision()),
        out_shape=(jax.ShapeDtypeStruct((bp, zp), jnp.float32),
                   jax.ShapeDtypeStruct((bp, zp), jnp.float32)),
        grid_spec=pltpu.PrefetchScalarGridSpec(
            num_scalar_prefetch=0,
            grid=grid,
            in_specs=[
                pl.BlockSpec((tbp, pn), lambda i: (i, 0)),     # packed x: streamed, 384 lanes
                pl.BlockSpec((pn, zp2), lambda i: (0, 0)),     # block-diag fused weight: resident
                pl.BlockSpec((1, zp2), lambda i: (0, 0)),      # fused bias: resident
            ],
            out_specs=(
                pl.BlockSpec((tbp, zp), lambda i: (i, 0)),     # mu head:    128-lane-dense stores
                pl.BlockSpec((tbp, zp), lambda i: (i, 0)),     # sigma head: 128-lane-dense stores
            ),
        ),
        compiler_params=pltpu.CompilerParams(
            dimension_semantics=("parallel",),                 # shard batch tiles across TCs (v7x)
            vmem_limit_bytes=32 * 1024 * 1024,                 # ~11 MiB needed at max tile
        ),
        cost_estimate=pl.CostEstimate(
            flops=2 * bp * pn * zp2,
            transcendentals=3 * bp * zp,                       # tanh + sigmoid + exp
            bytes_accessed=4 * (bp * pn + 2 * bp * zp + pn * zp2 + zp2),
        ),
    )(xp, w_fused, b_fused)

    # Unpack: (bp, PACK*z) -> (Bp, z) is a contiguous, free reshape (no strided slice).
    mu = mu_p.reshape(Bp, z_dim)
    sigma = sg_p.reshape(Bp, z_dim)
    if Bp != B:
        mu, sigma = mu[:B], sigma[:B]
    return mu, sigma


def init_params(key, z_dim, hidden_dim):
    """Deterministic synthetic parameters matching nn.Linear shapes
    (stored transposed: (in, out)); biases as (1, out)."""
    ks = jax.random.split(key, 8)

    def lin(kw, kb, fan_in, fan_out):
        bound = 1.0 / math.sqrt(fan_in)
        w = jax.random.uniform(kw, (fan_in, fan_out), jnp.float32, -bound, bound)
        b = jax.random.uniform(kb, (1, fan_out), jnp.float32, -bound, bound)
        return w, b

    w1, b1 = lin(ks[0], ks[1], N, hidden_dim)              # fc1
    w21, b21 = lin(ks[2], ks[3], hidden_dim, hidden_dim)   # fc21
    w31, b31 = lin(ks[4], ks[5], hidden_dim, z_dim)        # fc31
    w22, b22 = lin(ks[6], ks[7], hidden_dim, z_dim)        # fc22
    return (w1, b1, w21, b21, w31, b31, w22, b22)


def encoder_ref(x, params):
    """Pure-JAX reference (mirrors the PyTorch forward layer by layer)."""
    x2d = x.reshape(-1, N).astype(jnp.float32)
    w1, b1, w21, b21, w31, b31, w22, b22 = params
    hidden = jnp.dot(x2d, w1, precision=_HP) + b1
    mu = jnp.tanh(jnp.dot(jnp.dot(hidden, w21, precision=_HP) + b21, w31, precision=_HP) + b31)
    sigma = _INV_2E * jnp.exp(jax.nn.sigmoid(jnp.dot(hidden, w22, precision=_HP) + b22))
    return mu, sigma


if __name__ == "__main__":
    z_dim, hidden_dim = 8, 32
    key = jax.random.PRNGKey(0)
    k_x1, k_x2, k_p = jax.random.split(key, 3)

    params = init_params(k_p, z_dim, hidden_dim)
    fused_params = precompose_params(params)
    fwd = jax.jit(encoder_forward)

    # Case 1: (2, 8, 24) -> 16 logical rows (pack-aligned: no pad, no slice, 1 grid step).
    x1 = jax.random.normal(k_x1, (2, 8, N), dtype=jnp.float32)
    mu1, sg1 = jax.block_until_ready(fwd(x1, fused_params))
    mr1, sr1 = encoder_ref(x1, params)
    assert mu1.shape == (16, z_dim) and sg1.shape == (16, z_dim)
    assert jnp.allclose(mu1, mr1, atol=5e-5, rtol=5e-5), float(jnp.max(jnp.abs(mu1 - mr1)))
    assert jnp.allclose(sg1, sr1, atol=5e-5, rtol=5e-5), float(jnp.max(jnp.abs(sg1 - sr1)))

    # Case 2: ragged batch of 264 rows -> small tail pad to 272, 17 packed rows,
    # a 2-step grid and a ragged (masked) final block.
    x2 = jax.random.normal(k_x2, (264, N), dtype=jnp.float32)
    mu2, sg2 = jax.block_until_ready(fwd(x2, fused_params))
    mr2, sr2 = encoder_ref(x2, params)
    assert mu2.shape == (264, z_dim) and sg2.shape == (264, z_dim)
    assert jnp.allclose(mu2, mr2, atol=5e-5, rtol=5e-5), float(jnp.max(jnp.abs(mu2 - mr2)))
    assert jnp.allclose(sg2, sr2, atol=5e-5, rtol=5e-5), float(jnp.max(jnp.abs(sg2 - sr2)))

    print("KERNEL_OK")
</pallas_src>

<mosaic_0001>
module attributes {stable_mosaic.version = 11 : i64} {
  func.func @encoder_kernel(%arg0: i32, %arg1: memref<1x384xf32, #tpu.memory_space<vmem>>, %arg2: memref<384x256xf32, #tpu.memory_space<vmem>>, %arg3: memref<1x256xf32, #tpu.memory_space<vmem>>, %arg4: memref<1x128xf32, #tpu.memory_space<vmem>>, %arg5: memref<1x128xf32, #tpu.memory_space<vmem>>) attributes {dimension_semantics = [#tpu.dimension_semantics<parallel>], iteration_bounds = array<i64: 1>, scalar_prefetch = 0 : i64, scratch_operands = 0 : i64, tpu.core_type = #tpu.core_type<tc>, window_params = [{transform_indices = @transform_0, window_bounds = array<i64: 1, 384>}, {pipeline_mode = #tpu.pipeline_mode<synchronous>, transform_indices = @transform_1, window_bounds = array<i64: 384, 256>}, {pipeline_mode = #tpu.pipeline_mode<synchronous>, transform_indices = @transform_2, window_bounds = array<i64: 1, 256>}, {transform_indices = @transform_3, window_bounds = array<i64: 1, 128>}, {transform_indices = @transform_4, window_bounds = array<i64: 1, 128>}]} {
    %c0 = arith.constant 0 : index
    %c0_0 = arith.constant 0 : index
    %0 = vector.load %arg1[%c0, %c0_0] : memref<1x384xf32, #tpu.memory_space<vmem>>, vector<1x384xf32>
    %c0_1 = arith.constant 0 : index
    %c0_2 = arith.constant 0 : index
    %1 = vector.load %arg2[%c0_1, %c0_2] : memref<384x256xf32, #tpu.memory_space<vmem>>, vector<384x256xf32>
    %cst = arith.constant dense<0.000000e+00> : vector<1x256xf32>
    %2 = tpu.matmul %0, %1, %cst {dimension_numbers = #tpu.dot_dimension_numbers<[1], [0], [0], [1], [0, 0, 1, 1], [], []>, precision = #tpu.contract_precision<fp32>} : vector<1x384xf32>, vector<384x256xf32>, vector<1x256xf32> -> vector<1x256xf32>
    %c0_3 = arith.constant 0 : index
    %c0_4 = arith.constant 0 : index
    %3 = vector.load %arg3[%c0_3, %c0_4] : memref<1x256xf32, #tpu.memory_space<vmem>>, vector<1x256xf32>
    %4 = arith.addf %2, %3 : vector<1x256xf32>
    %5 = vector.extract_strided_slice %4 {offsets = [0, 0], sizes = [1, 128], strides = [1, 1]} : vector<1x256xf32> to vector<1x128xf32>
    %6 = math.tanh %5 : vector<1x128xf32>
    %c0_5 = arith.constant 0 : index
    %c0_6 = arith.constant 0 : index
    %7 = vector.load %arg4[%c0_5, %c0_6] : memref<1x128xf32, #tpu.memory_space<vmem>>, vector<1x128xf32>
    tpu.vector_store %arg4[%c0_5, %c0_6], %6 {strides = array<i32>} : memref<1x128xf32, #tpu.memory_space<vmem>>, vector<1x128xf32>,
    %8 = vector.extract_strided_slice %4 {offsets = [0, 128], sizes = [1, 128], strides = [1, 1]} : vector<1x256xf32> to vector<1x128xf32>
    %9 = arith.negf %8 : vector<1x128xf32>
    %10 = math.exp %9 : vector<1x128xf32>
    %cst_7 = arith.constant 1.000000e+00 : f32
    %11 = vector.broadcast %cst_7 : f32 to vector<1x128xf32>
    %12 = arith.addf %11, %10 : vector<1x128xf32>
    %13 = arith.divf %11, %12 : vector<1x128xf32>
    %14 = math.exp %13 : vector<1x128xf32>
    %cst_8 = arith.constant 0.183939725 : f32
    %15 = vector.broadcast %cst_8 : f32 to vector<1x128xf32>
    %16 = arith.mulf %15, %14 : vector<1x128xf32>
    %c0_9 = arith.constant 0 : index
    %c0_10 = arith.constant 0 : index
    %17 = vector.load %arg5[%c0_9, %c0_10] : memref<1x128xf32, #tpu.memory_space<vmem>>, vector<1x128xf32>
    tpu.vector_store %arg5[%c0_9, %c0_10], %16 {strides = array<i32>} : memref<1x128xf32, #tpu.memory_space<vmem>>, vector<1x128xf32>,
    return
  }
  func.func @transform_0(%arg0: i32) -> (i32, i32) {
    %c0_i32 = arith.constant 0 : i32
    %c0_i32_0 = arith.constant 0 : i32
    return %arg0, %c0_i32 : i32, i32
  }
  func.func @transform_1(%arg0: i32) -> (i32, i32) {
    %c0_i32 = arith.constant 0 : i32
    %c0_i32_0 = arith.constant 0 : i32
    %c0_i32_1 = arith.constant 0 : i32
    return %c0_i32, %c0_i32_0 : i32, i32
  }
  func.func @transform_2(%arg0: i32) -> (i32, i32) {
    %c0_i32 = arith.constant 0 : i32
    %c0_i32_0 = arith.constant 0 : i32
    %c0_i32_1 = arith.constant 0 : i32
    return %c0_i32, %c0_i32_0 : i32, i32
  }
  func.func @transform_3(%arg0: i32) -> (i32, i32) {
    %c0_i32 = arith.constant 0 : i32
    %c0_i32_0 = arith.constant 0 : i32
    return %arg0, %c0_i32 : i32, i32
  }
  func.func @transform_4(%arg0: i32) -> (i32, i32) {
    %c0_i32 = arith.constant 0 : i32
    %c0_i32_0 = arith.constant 0 : i32
    return %arg0, %c0_i32 : i32, i32
  }
}

</mosaic_0001>

<bundles_post_ra>
// kernel: encoder_forward.1
= control target key start
LH: loop header
LB: loop body
LE: loop exit
PB: predicated region body
PF: predicated region fallthrough
CT: control target
= control target key end

     0   :  { %10 = vsyncpa [#allocation3], 0  ;;  %s2952_s15 = smov [#allocation2]   ;;  %s4656_s0 = inlined_call_operand.vmem [shape: f32[1,384], index: 0, kind: input, shape index: {}]   ;;  %s4657_s1 = inlined_call_operand.hbm [shape: f32[384,256], index: 1, kind: input, shape index: {}]   ;;  %s4658_s2 = inlined_call_operand.vmem [shape: f32[1,256], index: 2, kind: input, shape index: {}]   ;;  %s4659_s3 = inlined_call_operand.vmem [shape: f32[1,128], index: 3, kind: output, shape index: {0}]   ;;  %s4660_s4 = inlined_call_operand.vmem [shape: f32[1,128], index: 4, kind: output, shape index: {1}]  }
   0x1   :  { %s18_s16 = sshll.u32 %s2952_s15, 4  ;;  %s2928_s19 = scalar_lea.hbm %s4657_s1, 12288  ;;  %s19_s16 = int_to_ptr.vmem [resolvable:$true] %s18_s16 }
   0x2   :  { %p2929_p0 = scmp.ne.s32.totalorder %s4657_s1, %s2928_s19  ;;  %p2932_p1 = scmp.lt.u32.totalorder %s2928_s19, %s4657_s1 }
   0x4   :  { %p2934_p2 = pnand %p2932_p1, %p2929_p0 }
   0x6   :  { %2937 = shalt.err (!%p2934_p2)
}
   0x7   :  { %s2938_s24 = scalar_lea.vmem %s19_s16, 12288  ;;  %p2943_p4 = scmp.lt.s32.totalorder %s19_s16, %s19_s16 }
   0x8   :  { %p2939_p3 = scmp.ne.s32.totalorder %s19_s16, %s2938_s24  ;;  %p2944_p5 = scmp.lt.s32.totalorder %s2938_s24, %s2938_s24 }
   0xa   :  { %p2945_p6 = por %p2944_p5, %p2943_p4 }
   0xc   :  { %p2946_p7 = pnand %p2945_p6, %p2939_p3 }
   0xe   :  { %2949 = shalt.err (!%p2946_p7)
}
   0xf   :  { %s2953_s25 = smov 256   ;;  %s2954_s26 = smov 16  }
  0x10   :  { %24 = dma.hbm_to_vmem [thread:$0]  %s4657_s1, 12288, %s19_s16, [#allocation3], %s2953_s25, %s2953_s25, %s2954_s26  }
  0x11   :  { %2950 = dma.done.wait [#allocation3], 12288  }
  0x12   :  { %2951 = vsyncadd [#allocation3], 4294955008  ;;  %v129_v0 = vlaneseq  ;;  %v32_v2 = vld [vmem:[#allocation2 + $0x8] sm:$0xff]  ;;  %v34_v3 = vld [vmem:[#allocation2 + $0x18] sm:$0xff] }
  0x13   :  { %v31_v4 = vld [vmem:[#allocation2] sm:$0xff]  ;;  %v155_v5 = vand.u32 4294901760, %v32_v2  ;;  %v159_v6 = vand.u32 4294901760, %v34_v3  ;;  %v33_v7 = vld [vmem:[#allocation2 + $0x10] sm:$0xff]  ;;  %v36_v9 = vld [vmem:[#allocation2 + $0x28] sm:$0xff] }
  0x14   :  { %v2993_v1 = vshrl.u32 %v129_v0, 7  ;;  %v157_v8 = vand.u32 4294901760, %v31_v4  ;;  %v38_v10 = vld [vmem:[#allocation2 + $0x38] sm:$0xff]  ;;  %v161_v11 = vand.u32 4294901760, %v33_v7  ;;  %v163_v12 = vand.u32 4294901760, %v36_v9  ;;  %v35_v14 = vld [vmem:[#allocation2 + $0x20] sm:$0xff] }
  0x15   :  { %v167_v13 = vand.u32 4294901760, %v38_v10  ;;  %v37_v15 = vld [vmem:[#allocation2 + $0x30] sm:$0xff]  ;;  %v2996_v17 = vpack.c.bf16 %v159_v6, %v155_v5  ;;  %v2998_v18 = vsub.f32 %v32_v2, %v155_v5  ;;  %v3000_v19 = vsub.f32 %v34_v3, %v159_v6  ;;  %v40_v21 = vld [vmem:[#allocation2 + $0x48] sm:$0xff]  ;;  %v42_v22 = vld [vmem:[#allocation2 + $0x58] sm:$0xff] }
  0x16   :  { %4924 = vst [vmem:[#allocation5_spill] sm:$0xff] %v2993_v1  ;;  %v165_v20 = vand.u32 4294901760, %v35_v14  ;;  %v3002_v23 = vpack.c.bf16 %v161_v11, %v157_v8  ;;  %v3006_v25 = vsub.f32 %v36_v9, %v163_v12  ;;  %v169_v29 = vand.u32 4294901760, %v37_v15  ;;  %v39_v43 = vld [vmem:[#allocation2 + $0x40] sm:$0xff]  ;;  %v41_v44 = vld [vmem:[#allocation2 + $0x50] sm:$0xff]  ;;  %v44_v48 = vld [vmem:[#allocation2 + $0x68] sm:$0xff] }
  0x17   :  { %4925 = vst [vmem:[#allocation6_spill] sm:$0xff] %v2996_v17  ;;  %4926 = vst [vmem:[#allocation7_spill] sm:$0xff] %v2998_v18  ;;  %v3004_v24 = vpack.c.bf16 %v167_v13, %v163_v12  ;;  %v3008_v26 = vsub.f32 %v38_v10, %v167_v13  ;;  %2317 = vmatprep.subr.bf16.mxu1 %v2996_v17  ;;  %v302_v27 = vand.u32 4294901760, %v2998_v18  ;;  %v314_v28 = vand.u32 4294901760, %v3000_v19  ;;  %v46_v58 = vld [vmem:[#allocation2 + $0x78] sm:$0xff]  ;;  %v43_v63 = vld [vmem:[#allocation2 + $0x60] sm:$0xff] }
  0x18   :  { %4927 = vst [vmem:[#allocation8_spill] sm:$0xff] %v3000_v19  ;;  %4928 = vst [vmem:[#allocation9_spill] sm:$0xff] %v3002_v23  ;;  %v3013_v30 = vsub.f32 %v35_v14, %v165_v20  ;;  %2319 = vmatpush1.bf16.msra.mxu1 %v3002_v23  ;;  %v3016_v31 = vsub.f32 %v31_v4, %v157_v8  ;;  %v3018_v32 = vsub.f32 %v33_v7, %v161_v11  ;;  %v45_v9 = vld [vmem:[#allocation2 + $0x70] sm:$0xff]  ;;  %v48_v14 = vld [vmem:[#allocation2 + $0x88] sm:$0xff] }
  0x19   :  { %4929 = vst [vmem:[#allocation10_spill] sm:$0xff] %v3004_v24  ;;  %v171_v33 = vand.u32 4294901760, %v40_v21  ;;  %v175_v34 = vand.u32 4294901760, %v42_v22  ;;  %2321 = vmatprep.subr.bf16.mxu1 %v3004_v24  ;;  %v3022_v35 = vsub.f32 %v2998_v18, %v302_v27  ;;  %v3025_v36 = vsub.f32 %v3000_v19, %v314_v28  ;;  %v55_v49 = vld [vmem:[#allocation2 + $0xc0] sm:$0xff] }
  0x1a   :  { %4930 = vst [vmem:[#allocation11_spill] sm:$0xff] %v3013_v30  ;;  %4931 = vst [vmem:[#allocation12_spill] sm:$0xff] %v3016_v31  ;;  %v2572_v37 = vpack.c.bf16 %v314_v28, %v302_v27  ;;  %v3027_v38 = vpack.c.bf16 %v169_v29, %v165_v20  ;;  %v3029_v39 = vsub.f32 %v37_v15, %v169_v29  ;;  %v308_v40 = vand.u32 4294901760, %v3016_v31  ;;  %v50_v15 = vld [vmem:[#allocation2 + $0x98] sm:$0xff]  ;;  %v56_v20 = vld [vmem:[#allocation2 + $0xc8] sm:$0xff] }
  0x1b   :  { %4932 = vst [vmem:[#allocation13_spill] sm:$0xff] %v3018_v32  ;;  %v320_v41 = vand.u32 4294901760, %v3018_v32  ;;  %v3033_v42 = vpack.c.bf16 %v175_v34, %v171_v33  ;;  %v3036_v46 = vsub.f32 %v40_v21, %v171_v33  ;;  %v3038_v47 = vsub.f32 %v42_v22, %v175_v34  ;;  %v63_v19 = vld [vmem:[#allocation2 + $0x100] sm:$0xff] }
  0x1c   :  { %4933 = vst [vmem:[#allocation14_spill] sm:$0xff] %v3027_v38  ;;  %4934 = vst [vmem:[#allocation15_spill] sm:$0xff] %v3029_v39  ;;  %2573 = vmatprep.subr.bf16.mxu0 %v2572_v37  ;;  %2323 = vmatpush1.bf16.msra.mxu1 %v3027_v38  ;;  %v3043_v50 = vsub.f32 %v3016_v31, %v308_v40  ;;  %v4666_v53 = vand.u32 4294901760, %v3006_v25  ;;  %v4665_v54 = vand.u32 4294901760, %v3008_v26  ;;  %v173_v55 = vand.u32 4294901760, %v39_v43 }
  0x1d   :  { %4935 = vst [vmem:[#allocation16_spill] sm:$0xff] %v3033_v42  ;;  %v3046_v51 = vsub.f32 %v3018_v32, %v320_v41  ;;  %v2574_v52 = vpack.c.bf16 %v320_v41, %v308_v40  ;;  %2325 = vmatprep.subr.bf16.mxu1 %v3033_v42  ;;  %v177_v56 = vand.u32 4294901760, %v41_v44  ;;  %v332_v57 = vand.u32 4294901760, %v3013_v30  ;;  %v61_v32 = vld [vmem:[#allocation2 + $0xf0] sm:$0xff] }
  0x1e   :  { %v344_v61 = vand.u32 4294901760, %v3029_v39  ;;  %v179_v62 = vand.u32 4294901760, %v44_v48  ;;  %v2576_v2 = vpack.c.bf16 %v4665_v54, %v4666_v53  ;;  %v3062_v4 = vsub.f32 %v39_v43, %v173_v55  ;;  %v58_v53 = vld [vmem:[#allocation2 + $0xd8] sm:$0xff] }
  0x1f   :  { %2575 = vmatpush1.bf16.msra.mxu0 %v2574_v52  ;;  %v3060_v3 = vpack.c.bf16 %v177_v56, %v173_v55  ;;  %v3064_v5 = vsub.f32 %v41_v44, %v177_v56  ;;  %v3067_v6 = vsub.f32 %v3013_v30, %v332_v57  ;;  %v183_v8 = vand.u32 4294901760, %v46_v58  ;;  %v47_v44 = vld [vmem:[#allocation2 + $0x80] sm:$0xff] }
  0x20   :  { %4937 = vst [vmem:[#allocation18_spill] sm:$0xff] %v3062_v4  ;;  %v2578_v7 = vpack.c.bf16 %v344_v61, %v332_v57  ;;  %2577 = vmatprep.subr.bf16.mxu0 %v2576_v2  ;;  %v3070_v10 = vsub.f32 %v44_v48, %v179_v62  ;;  %v4662_v11 = vand.u32 4294901760, %v3036_v46  ;;  %v4661_v12 = vand.u32 4294901760, %v3038_v47  ;;  %v49_v57 = vld [vmem:[#allocation2 + $0x90] sm:$0xff]  ;;  %v52_v2 = vld [vmem:[#allocation2 + $0xa8] sm:$0xff] }
  0x21   :  { %4936 = vst [vmem:[#allocation17_spill] sm:$0xff] %v3060_v3  ;;  %4938 = vst [vmem:[#allocation19_spill] sm:$0xff] %v3064_v5  ;;  %2327 = vmatpush1.bf16.msra.mxu1 %v3060_v3  ;;  %v181_v13 = vand.u32 4294901760, %v43_v63  ;;  %v3076_v21 = vsub.f32 %v3029_v39, %v344_v61  ;;  %v3078_v22 = vpack.c.bf16 %v183_v8, %v179_v62  ;;  %v185_v29 = vand.u32 4294901760, %v45_v9 }
  0x22   :  { %v3080_v27 = vsub.f32 %v46_v58, %v183_v8  ;;  %v2580_v28 = vpack.c.bf16 %v4661_v12, %v4662_v11  ;;  %v356_v34 = vand.u32 4294901760, %v3062_v4  ;;  %v368_v37 = vand.u32 4294901760, %v3064_v5  ;;  %v51_v8 = vld [vmem:[#allocation2 + $0xa0] sm:$0xff] }
  0x23   :  { %2579 = vmatpush1.bf16.msra.mxu0 %v2578_v7  ;;  %4939 = vst [vmem:[#allocation20_spill] sm:$0xff] %v3078_v22  ;;  %v3086_v33 = vsub.f32 %v43_v63, %v181_v13  ;;  %2329 = vmatprep.subr.bf16.mxu1 %v3078_v22  ;;  %v187_v40 = vand.u32 4294901760, %v48_v14  ;;  %v191_v41 = vand.u32 4294901760, %v50_v15  ;;  %v4664_v43 = vand.u32 4294901760, %v3070_v10  ;;  %v54_v7 = vld [vmem:[#allocation2 + $0xb8] sm:$0xff] }
  0x24   :  { %2581 = vmatprep.subr.bf16.mxu0 %v2580_v28  ;;  %v3092_v48 = vpack.c.bf16 %v185_v29, %v181_v13  ;;  %v3094_v52 = vsub.f32 %v45_v9, %v185_v29  ;;  %v3097_v55 = vsub.f32 %v3062_v4, %v356_v34  ;;  %v4663_v56 = vand.u32 4294901760, %v3080_v27 }
  0x25   :  { %4940 = vst [vmem:[#allocation21_spill] sm:$0xff] %v3086_v33  ;;  %v3101_v58 = vsub.f32 %v3064_v5, %v368_v37  ;;  %v2582_v61 = vpack.c.bf16 %v368_v37, %v356_v34  ;;  %v3103_v62 = vpack.c.bf16 %v191_v41, %v187_v40  ;;  %v3105_v63 = vsub.f32 %v48_v14, %v187_v40  ;;  %v59_v5 = vld [vmem:[#allocation2 + $0xe0] sm:$0xff] }
  0x26   :  { %4941 = vst [vmem:[#allocation22_spill] sm:$0xff] %v3092_v48  ;;  %4942 = vst [vmem:[#allocation23_spill] sm:$0xff] %v3094_v52  ;;  %2331 = vmatpush1.bf16.msra.mxu1 %v3092_v48  ;;  %v2584_v13 = vpack.c.bf16 %v4663_v56, %v4664_v43  ;;  %v189_v28 = vand.u32 4294901760, %v47_v44  ;;  %v3115_v29 = vsub.f32 %v50_v15, %v191_v41  ;;  %v193_v14 = vand.u32 4294901760, %v49_v57  ;;  %v53_v43 = vld [vmem:[#allocation2 + $0xb0] sm:$0xff] }
  0x27   :  { %4943 = vst [vmem:[#allocation24_spill] sm:$0xff] %v3103_v62  ;;  %2583 = vmatpush1.bf16.msra.mxu0 %v2582_v61  ;;  %2333 = vmatprep.subr.bf16.mxu1 %v3103_v62  ;;  %v380_v34 = vand.u32 4294901760, %v3086_v33  ;;  %v392_v37 = vand.u32 4294901760, %v3094_v52  ;;  %v195_v12 = vand.u32 4294901760, %v52_v2  ;;  %v199_v11 = vand.u32 4294901760, %v54_v7  ;;  %v69_v62 = vld [vmem:[#allocation2 + $0x130] sm:$0xff] }
  0x28   :  { %2585 = vmatprep.subr.bf16.mxu0 %v2584_v13  ;;  %v3120_v9 = vsub.f32 %v47_v44, %v189_v28  ;;  %v3122_v56 = vpack.c.bf16 %v193_v14, %v189_v28  ;;  %v3124_v61 = vsub.f32 %v49_v57, %v193_v14  ;;  %v4672_v41 = vand.u32 4294901760, %v3105_v63 }
  0x29   :  { %v3127_v15 = vsub.f32 %v3086_v33, %v380_v34  ;;  %v3131_v54 = vsub.f32 %v3094_v52, %v392_v37  ;;  %v2586_v13 = vpack.c.bf16 %v392_v37, %v380_v34  ;;  %v3133_v44 = vpack.c.bf16 %v199_v11, %v195_v12  ;;  %v57_v52 = vld [vmem:[#allocation2 + $0xd0] sm:$0xff]  ;;  %v60_v33 = vld [vmem:[#allocation2 + $0xe8] sm:$0xff] }
  0x2a   :  { %4944 = vst [vmem:[#allocation25_spill] sm:$0xff] %v3120_v9  ;;  %4945 = vst [vmem:[#allocation26_spill] sm:$0xff] %v3122_v56  ;;  %v3135_v40 = vsub.f32 %v52_v2, %v195_v12  ;;  %2335 = vmatpush1.bf16.msra.mxu1 %v3122_v56  ;;  %v3139_v28 = vsub.f32 %v54_v7, %v199_v11  ;;  %v4671_v14 = vand.u32 4294901760, %v3115_v29  ;;  %v197_v0 = vand.u32 4294901760, %v51_v8 }
  0x2b   :  { %4946 = vst [vmem:[#allocation27_spill] sm:$0xff] %v3124_v61  ;;  %4947 = vst [vmem:[#allocation28_spill] sm:$0xff] %v3133_v44  ;;  %2587 = vmatpush1.bf16.msra.mxu0 %v2586_v13  ;;  %2337 = vmatprep.subr.bf16.mxu1 %v3133_v44  ;;  %v201_v60 = vand.u32 4294901760, %v53_v43  ;;  %v404_v34 = vand.u32 4294901760, %v3120_v9  ;;  %v416_v37 = vand.u32 4294901760, %v3124_v61  ;;  %v203_v12 = vand.u32 4294901760, %v56_v20 }
  0x2c   :  { %v2588_v2 = vpack.c.bf16 %v4671_v14, %v4672_v41  ;;  %v3149_v57 = vsub.f32 %v51_v8, %v197_v0  ;;  %v207_v11 = vand.u32 4294901760, %v58_v53  ;;  %v209_v14 = vand.u32 4294901760, %v57_v52 }
  0x2d   :  { %v3152_v13 = vpack.c.bf16 %v201_v60, %v197_v0  ;;  %v3154_v59 = vsub.f32 %v53_v43, %v201_v60  ;;  %v3157_v45 = vsub.f32 %v3120_v9, %v404_v34  ;;  %v3160_v16 = vsub.f32 %v3124_v61, %v416_v37  ;;  %v62_v0 = vld [vmem:[#allocation2 + $0xf8] sm:$0xff] }
  0x2e   :  { %4948 = vst [vmem:[#allocation29_spill] sm:$0xff] %v3149_v57  ;;  %2589 = vmatprep.subr.bf16.mxu0 %v2588_v2  ;;  %v2590_v8 = vpack.c.bf16 %v416_v37, %v404_v34  ;;  %v3163_v41 = vpack.c.bf16 %v207_v11, %v203_v12  ;;  %v3165_v7 = vsub.f32 %v56_v20, %v203_v12  ;;  %v4687_v61 = vand.u32 4294901760, %v3139_v28  ;;  %v64_v12 = vld [vmem:[#allocation2 + $0x108] sm:$0xff] }
  0x2f   :  { %4949 = vst [vmem:[#allocation30_spill] sm:$0xff] %v3152_v13  ;;  %4950 = vst [vmem:[#allocation31_spill] sm:$0xff] %v3154_v59  ;;  %2339 = vmatpush1.bf16.msra.mxu1 %v3152_v13  ;;  %v3169_v43 = vsub.f32 %v58_v53, %v207_v11  ;;  %v205_v9 = vand.u32 4294901760, %v55_v49  ;;  %v428_v34 = vand.u32 4294901760, %v3149_v57  ;;  %v440_v37 = vand.u32 4294901760, %v3154_v59  ;;  %v68_v13 = vld [vmem:[#allocation2 + $0x128] sm:$0xff] }
  0x30   :  { %4951 = vst [vmem:[#allocation32_spill] sm:$0xff] %v3163_v41  ;;  %2591 = vmatpush1.bf16.msra.mxu0 %v2590_v8  ;;  %2341 = vmatprep.subr.bf16.mxu1 %v3163_v41  ;;  %v211_v20 = vand.u32 4294901760, %v60_v33  ;;  %v4952_v2 = vand.u32 4294901760, %v3135_v40  ;;  %v215_v60 = vand.u32 4294901760, %v62_v0  ;;  %v3184_v4 = vsub.f32 %v57_v52, %v209_v14  ;;  %v65_v41 = vld [vmem:[#allocation2 + $0x110] sm:$0xff] }
  0x31   :  { %v3180_v11 = vsub.f32 %v55_v49, %v205_v9  ;;  %v3182_v8 = vpack.c.bf16 %v209_v14, %v205_v9  ;;  %v3187_v39 = vsub.f32 %v3149_v57, %v428_v34  ;;  %v3191_v31 = vsub.f32 %v3154_v59, %v440_v37  ;;  %v66_v9 = vld [vmem:[#allocation2 + $0x118] sm:$0xff] }
  0x32   :  { %v2592_v53 = vpack.c.bf16 %v4687_v61, %v4952_v2  ;;  %4955 = vst [vmem:[#allocation35_spill] sm:$0xff] %v3184_v4  ;;  %v2594_v2 = vpack.c.bf16 %v440_v37, %v428_v34  ;;  %v3193_v49 = vpack.c.bf16 %v215_v60, %v211_v20  ;;  %v3195_v61 = vsub.f32 %v60_v33, %v211_v20 }
  0x33   :  { %4953 = vst [vmem:[#allocation33_spill] sm:$0xff] %v3180_v11  ;;  %4954 = vst [vmem:[#allocation34_spill] sm:$0xff] %v3182_v8  ;;  %2343 = vmatpush1.bf16.msra.mxu1 %v3182_v8  ;;  %v3199_v14 = vsub.f32 %v62_v0, %v215_v60  ;;  %v4702_v30 = vand.u32 4294901760, %v3169_v43  ;;  %v213_v57 = vand.u32 4294901760, %v59_v5  ;;  %v452_v34 = vand.u32 4294901760, %v3180_v11 }
  0x34   :  { %2593 = vmatprep.subr.bf16.mxu0 %v2592_v53  ;;  %4956 = vst [vmem:[#allocation36_spill] sm:$0xff] %v3193_v49  ;;  %4957 = vst [vmem:[#allocation37_spill] sm:$0xff] %v3195_v61  ;;  %2345 = vmatprep.subr.bf16.mxu1 %v3193_v49  ;;  %v217_v53 = vand.u32 4294901760, %v61_v32  ;;  %v464_v37 = vand.u32 4294901760, %v3184_v4  ;;  %v219_v33 = vand.u32 4294901760, %v64_v12  ;;  %v4959_v20 = vand.u32 4294901760, %v3165_v7 }
  0x35   :  { %4958 = vst [vmem:[#allocation38_spill] sm:$0xff] %v3199_v14  ;;  %2595 = vmatpush1.bf16.msra.mxu0 %v2594_v2  ;;  %v3209_v52 = vsub.f32 %v59_v5, %v213_v57  ;;  %v223_v0 = vand.u32 4294901760, %v66_v9  ;;  %v3217_v49 = vsub.f32 %v3180_v11, %v452_v34  ;;  %v221_v11 = vand.u32 4294901760, %v63_v19 }
  0x36   :  { %v2596_v59 = vpack.c.bf16 %v4702_v30, %v4959_v20  ;;  %v3212_v2 = vpack.c.bf16 %v217_v53, %v213_v57  ;;  %v3214_v18 = vsub.f32 %v61_v32, %v217_v53  ;;  %v3220_v8 = vsub.f32 %v3184_v4, %v464_v37  ;;  %v70_v57 = vld [vmem:[#allocation2 + $0x138] sm:$0xff] }
  0x37   :  { %4960 = vst [vmem:[#allocation39_spill] sm:$0xff] %v3209_v52  ;;  %v2598_v5 = vpack.c.bf16 %v464_v37, %v452_v34  ;;  %v3223_v30 = vpack.c.bf16 %v223_v0, %v219_v33  ;;  %v3225_v60 = vsub.f32 %v64_v12, %v219_v33  ;;  %v3229_v53 = vsub.f32 %v66_v9, %v223_v0  ;;  %v72_v37 = vld [vmem:[#allocation2 + $0x148] sm:$0xff] }
  0x38   :  { %4961 = vst [vmem:[#allocation40_spill] sm:$0xff] %v3212_v2  ;;  %4962 = vst [vmem:[#allocation41_spill] sm:$0xff] %v3214_v18  ;;  %2597 = vmatprep.subr.bf16.mxu0 %v2596_v59  ;;  %2347 = vmatpush1.bf16.msra.mxu1 %v3212_v2  ;;  %v4717_v4 = vand.u32 4294901760, %v3199_v14  ;;  %v225_v20 = vand.u32 4294901760, %v65_v41  ;;  %v476_v59 = vand.u32 4294901760, %v3209_v52  ;;  %v488_v34 = vand.u32 4294901760, %v3214_v18 }
  0x39   :  { %4963 = vst [vmem:[#allocation42_spill] sm:$0xff] %v3223_v30  ;;  %4964 = vst [vmem:[#allocation43_spill] sm:$0xff] %v3225_v60  ;;  %2599 = vmatpush1.bf16.msra.mxu0 %v2598_v5  ;;  %2349 = vmatprep.subr.bf16.mxu1 %v3223_v30  ;;  %v227_v12 = vand.u32 4294901760, %v68_v13  ;;  %v4966_v33 = vand.u32 4294901760, %v3195_v61  ;;  %v3240_v0 = vsub.f32 %v63_v19, %v221_v11  ;;  %v231_v32 = vand.u32 4294901760, %v70_v57  ;;  %v67_v2 = vld [vmem:[#allocation2 + $0x120] sm:$0xff] }
  0x3a   :  { %4965 = vst [vmem:[#allocation44_spill] sm:$0xff] %v3229_v53  ;;  %v3242_v5 = vpack.c.bf16 %v225_v20, %v221_v11  ;;  %v3244_v30 = vsub.f32 %v65_v41, %v225_v20  ;;  %v3247_v44 = vsub.f32 %v3209_v52, %v476_v59  ;;  %v3251_v48 = vsub.f32 %v3214_v18, %v488_v34  ;;  %v74_v11 = vld [vmem:[#allocation2 + $0x158] sm:$0xff] }
  0x3b   :  { %v2600_v9 = vpack.c.bf16 %v4717_v4, %v4966_v33  ;;  %4967 = vst [vmem:[#allocation45_spill] sm:$0xff] %v3240_v0  ;;  %v2602_v33 = vpack.c.bf16 %v488_v34, %v476_v59  ;;  %v3253_v19 = vpack.c.bf16 %v231_v32, %v227_v12  ;;  %v3255_v4 = vsub.f32 %v68_v13, %v227_v12 }
  0x3c   :  { %4968 = vst [vmem:[#allocation46_spill] sm:$0xff] %v3242_v5  ;;  %4969 = vst [vmem:[#allocation47_spill] sm:$0xff] %v3244_v30  ;;  %2351 = vmatpush1.bf16.msra.mxu1 %v3242_v5  ;;  %v3259_v20 = vsub.f32 %v70_v57, %v231_v32  ;;  %v4731_v56 = vand.u32 4294901760, %v3229_v53  ;;  %v229_v52 = vand.u32 4294901760, %v67_v2  ;;  %v500_v59 = vand.u32 4294901760, %v3240_v0  ;;  %v71_v5 = vld [vmem:[#allocation2 + $0x140] sm:$0xff] }
  0x3d   :  { %4970 = vst [vmem:[#allocation48_spill] sm:$0xff] %v3247_v44  ;;  %2601 = vmatprep.subr.bf16.mxu0 %v2600_v9  ;;  %4971 = vst [vmem:[#allocation49_spill] sm:$0xff] %v3251_v48  ;;  %2353 = vmatprep.subr.bf16.mxu1 %v3253_v19  ;;  %v233_v9 = vand.u32 4294901760, %v69_v62  ;;  %v512_v34 = vand.u32 4294901760, %v3244_v30  ;;  %v235_v13 = vand.u32 4294901760, %v72_v37  ;;  %v4975_v12 = vand.u32 4294901760, %v3225_v60 }
  0x3e   :  { %4972 = vst [vmem:[#allocation50_spill] sm:$0xff] %v3253_v19  ;;  %4973 = vst [vmem:[#allocation51_spill] sm:$0xff] %v3255_v4  ;;  %2603 = vmatpush1.bf16.msra.mxu0 %v2602_v33  ;;  %v3269_v41 = vsub.f32 %v67_v2, %v229_v52  ;;  %v239_v57 = vand.u32 4294901760, %v74_v11  ;;  %v3277_v22 = vsub.f32 %v3240_v0, %v500_v59  ;;  %v73_v60 = vld [vmem:[#allocation2 + $0x150] sm:$0xff]  ;;  %v76_v44 = vld [vmem:[#allocation2 + $0x168] sm:$0xff]  ;;  %v237_v0 = vand.u32 4294901760, %v71_v5 }
  0x3f   :  { %4974 = vst [vmem:[#allocation52_spill] sm:$0xff] %v3259_v20  ;;  %v2604_v18 = vpack.c.bf16 %v4731_v56, %v4975_v12  ;;  %v3272_v33 = vpack.c.bf16 %v233_v9, %v229_v52  ;;  %v3274_v19 = vsub.f32 %v69_v62, %v233_v9  ;;  %v3280_v3 = vsub.f32 %v3244_v30, %v512_v34  ;;  %v78_v52 = vld [vmem:[#allocation2 + $0x178] sm:$0xff]  ;;  %v77_v48 = vld [vmem:[#allocation2 + $0x170] sm:$0xff] }
  0x40   :  { %4976 = vst [vmem:[#allocation53_spill] sm:$0xff] %v3269_v41  ;;  %4979 = vst [vmem:[#allocation56_spill] sm:$0xff] %v3277_v22  ;;  %v2606_v2 = vpack.c.bf16 %v512_v34, %v500_v59  ;;  %v3283_v56 = vpack.c.bf16 %v239_v57, %v235_v13  ;;  %v3285_v32 = vsub.f32 %v72_v37, %v235_v13  ;;  %v4744_v30 = vand.u32 4294901760, %v3259_v20  ;;  %v80_v34 = vld [vmem:[#allocation2 + $0x188] sm:$0xff] }
  0x41   :  { %4977 = vst [vmem:[#allocation54_spill] sm:$0xff] %v3272_v33  ;;  %4978 = vst [vmem:[#allocation55_spill] sm:$0xff] %v3274_v19  ;;  %2605 = vmatprep.subr.bf16.mxu0 %v2604_v18  ;;  %2355 = vmatpush1.bf16.msra.mxu1 %v3272_v33  ;;  %v3289_v9 = vsub.f32 %v74_v11, %v239_v57  ;;  %v241_v12 = vand.u32 4294901760, %v73_v60  ;;  %v524_v18 = vand.u32 4294901760, %v3269_v41  ;;  %v536_v59 = vand.u32 4294901760, %v3274_v19  ;;  %v75_v33 = vld [vmem:[#allocation2 + $0x160] sm:$0xff] }
  0x42   :  { %4980 = vst [vmem:[#allocation57_spill] sm:$0xff] %v3280_v3  ;;  %4981 = vst [vmem:[#allocation58_spill] sm:$0xff] %v3283_v56  ;;  %2607 = vmatpush1.bf16.msra.mxu0 %v2606_v2  ;;  %2357 = vmatprep.subr.bf16.mxu1 %v3283_v56  ;;  %v243_v37 = vand.u32 4294901760, %v76_v44  ;;  %v4984_v13 = vand.u32 4294901760, %v3255_v4  ;;  %v3300_v57 = vsub.f32 %v71_v5, %v237_v0  ;;  %v247_v62 = vand.u32 4294901760, %v78_v52  ;;  %v84_v3 = vld [vmem:[#allocation2 + $0x1a8] sm:$0xff] }
  0x43   :  { %4982 = vst [vmem:[#allocation59_spill] sm:$0xff] %v3285_v32  ;;  %4983 = vst [vmem:[#allocation60_spill] sm:$0xff] %v3289_v9  ;;  %v3302_v2 = vpack.c.bf16 %v241_v12, %v237_v0  ;;  %v3304_v56 = vsub.f32 %v73_v60, %v241_v12  ;;  %v3307_v22 = vsub.f32 %v3269_v41, %v524_v18  ;;  %v82_v0 = vld [vmem:[#allocation2 + $0x198] sm:$0xff]  ;;  %v4757_v53 = vand.u32 4294901760, %v3289_v9 }
  0x44   :  { %v2608_v11 = vpack.c.bf16 %v4744_v30, %v4984_v13  ;;  %4985 = vst [vmem:[#allocation61_spill] sm:$0xff] %v3300_v57  ;;  %v3311_v4 = vsub.f32 %v3274_v19, %v536_v59  ;;  %v2610_v13 = vpack.c.bf16 %v536_v59, %v524_v18  ;;  %v3313_v5 = vpack.c.bf16 %v247_v62, %v243_v37 }
  0x45   :  { %4986 = vst [vmem:[#allocation62_spill] sm:$0xff] %v3302_v2  ;;  %4987 = vst [vmem:[#allocation63_spill] sm:$0xff] %v3304_v56  ;;  %v3315_v30 = vsub.f32 %v76_v44, %v243_v37  ;;  %2359 = vmatpush1.bf16.msra.mxu1 %v3302_v2  ;;  %v3319_v12 = vsub.f32 %v78_v52, %v247_v62  ;;  %v245_v41 = vand.u32 4294901760, %v75_v33  ;;  %v548_v18 = vand.u32 4294901760, %v3300_v57  ;;  %v79_v2 = vld [vmem:[#allocation2 + $0x180] sm:$0xff] }
  0x46   :  { %4988 = vst [vmem:[#allocation64_spill] sm:$0xff] %v3307_v22  ;;  %2609 = vmatprep.subr.bf16.mxu0 %v2608_v11  ;;  %4989 = vst [vmem:[#allocation65_spill] sm:$0xff] %v3311_v4  ;;  %2361 = vmatprep.subr.bf16.mxu1 %v3313_v5  ;;  %v249_v11 = vand.u32 4294901760, %v77_v48  ;;  %v560_v59 = vand.u32 4294901760, %v3304_v56  ;;  %v251_v44 = vand.u32 4294901760, %v80_v34  ;;  %v4993_v37 = vand.u32 4294901760, %v3285_v32 }
  0x47   :  { %4990 = vst [vmem:[#allocation66_spill] sm:$0xff] %v3313_v5  ;;  %4991 = vst [vmem:[#allocation67_spill] sm:$0xff] %v3315_v30  ;;  %2611 = vmatpush1.bf16.msra.mxu0 %v2610_v13  ;;  %v3329_v60 = vsub.f32 %v75_v33, %v245_v41  ;;  %v255_v52 = vand.u32 4294901760, %v82_v0  ;;  %v3337_v22 = vsub.f32 %v3300_v57, %v548_v18  ;;  %v81_v32 = vld [vmem:[#allocation2 + $0x190] sm:$0xff]  ;;  %v253_v57 = vand.u32 4294901760, %v79_v2 }
  0x48   :  { %4992 = vst [vmem:[#allocation68_spill] sm:$0xff] %v3319_v12  ;;  %v2612_v19 = vpack.c.bf16 %v4757_v53, %v4993_v37  ;;  %v3332_v13 = vpack.c.bf16 %v249_v11, %v245_v41  ;;  %v3334_v5 = vsub.f32 %v77_v48, %v249_v11  ;;  %v3340_v20 = vsub.f32 %v3304_v56, %v560_v59  ;;  %v86_v41 = vld [vmem:[#allocation2 + $0x1b8] sm:$0xff]  ;;  %v85_v4 = vld [vmem:[#allocation2 + $0x1b0] sm:$0xff] }
  0x49   :  { %4994 = vst [vmem:[#allocation69_spill] sm:$0xff] %v3329_v60  ;;  %4997 = vst [vmem:[#allocation72_spill] sm:$0xff] %v3337_v22  ;;  %v2614_v33 = vpack.c.bf16 %v560_v59, %v548_v18  ;;  %v3343_v53 = vpack.c.bf16 %v255_v52, %v251_v44  ;;  %v3345_v62 = vsub.f32 %v80_v34, %v251_v44  ;;  %v4770_v56 = vand.u32 4294901760, %v3319_v12  ;;  %v88_v59 = vld [vmem:[#allocation2 + $0x1c8] sm:$0xff] }
  0x4a   :  { %4995 = vst [vmem:[#allocation70_spill] sm:$0xff] %v3332_v13  ;;  %4996 = vst [vmem:[#allocation71_spill] sm:$0xff] %v3334_v5  ;;  %2613 = vmatprep.subr.bf16.mxu0 %v2612_v19  ;;  %2363 = vmatpush1.bf16.msra.mxu1 %v3332_v13  ;;  %v3349_v11 = vsub.f32 %v82_v0, %v255_v52  ;;  %v257_v37 = vand.u32 4294901760, %v81_v32  ;;  %v572_v19 = vand.u32 4294901760, %v3329_v60  ;;  %v584_v18 = vand.u32 4294901760, %v3334_v5  ;;  %v83_v13 = vld [vmem:[#allocation2 + $0x1a0] sm:$0xff] }
  0x4b   :  { %4998 = vst [vmem:[#allocation73_spill] sm:$0xff] %v3340_v20  ;;  %4999 = vst [vmem:[#allocation74_spill] sm:$0xff] %v3343_v53  ;;  %2615 = vmatpush1.bf16.msra.mxu0 %v2614_v33  ;;  %2365 = vmatprep.subr.bf16.mxu1 %v3343_v53  ;;  %v259_v34 = vand.u32 4294901760, %v84_v3  ;;  %v5002_v44 = vand.u32 4294901760, %v3315_v30  ;;  %v3360_v52 = vsub.f32 %v79_v2, %v253_v57  ;;  %v263_v48 = vand.u32 4294901760, %v86_v41  ;;  %v92_v20 = vld [vmem:[#allocation2 + $0x1e8] sm:$0xff] }
  0x4c   :  { %5000 = vst [vmem:[#allocation75_spill] sm:$0xff] %v3345_v62  ;;  %5001 = vst [vmem:[#allocation76_spill] sm:$0xff] %v3349_v11  ;;  %v3362_v33 = vpack.c.bf16 %v257_v37, %v253_v57  ;;  %v3364_v53 = vsub.f32 %v81_v32, %v257_v37  ;;  %v3367_v22 = vsub.f32 %v3329_v60, %v572_v19  ;;  %v90_v57 = vld [vmem:[#allocation2 + $0x1d8] sm:$0xff]  ;;  %v4783_v9 = vand.u32 4294901760, %v3349_v11 }
  0x4d   :  { %v2616_v0 = vpack.c.bf16 %v4770_v56, %v5002_v44  ;;  %5003 = vst [vmem:[#allocation77_spill] sm:$0xff] %v3360_v52  ;;  %v3371_v30 = vsub.f32 %v3334_v5, %v584_v18  ;;  %v2618_v44 = vpack.c.bf16 %v584_v18, %v572_v19  ;;  %v3373_v2 = vpack.c.bf16 %v263_v48, %v259_v34 }
  0x4e   :  { %5004 = vst [vmem:[#allocation78_spill] sm:$0xff] %v3362_v33  ;;  %5005 = vst [vmem:[#allocation79_spill] sm:$0xff] %v3364_v53  ;;  %v3375_v56 = vsub.f32 %v84_v3, %v259_v34  ;;  %2367 = vmatpush1.bf16.msra.mxu1 %v3362_v33  ;;  %v3379_v37 = vsub.f32 %v86_v41, %v263_v48  ;;  %v261_v60 = vand.u32 4294901760, %v83_v13  ;;  %v596_v19 = vand.u32 4294901760, %v3360_v52  ;;  %v87_v33 = vld [vmem:[#allocation2 + $0x1c0] sm:$0xff] }
  0x4f   :  { %5006 = vst [vmem:[#allocation80_spill] sm:$0xff] %v3367_v22  ;;  %2617 = vmatprep.subr.bf16.mxu0 %v2616_v0  ;;  %5007 = vst [vmem:[#allocation81_spill] sm:$0xff] %v3371_v30  ;;  %2369 = vmatprep.subr.bf16.mxu1 %v3373_v2  ;;  %v265_v0 = vand.u32 4294901760, %v85_v4  ;;  %v608_v18 = vand.u32 4294901760, %v3364_v53  ;;  %v267_v3 = vand.u32 4294901760, %v88_v59  ;;  %v5011_v34 = vand.u32 4294901760, %v3345_v62 }
  0x50   :  { %5008 = vst [vmem:[#allocation82_spill] sm:$0xff] %v3373_v2  ;;  %5009 = vst [vmem:[#allocation83_spill] sm:$0xff] %v3375_v56  ;;  %2619 = vmatpush1.bf16.msra.mxu0 %v2618_v44  ;;  %v3389_v32 = vsub.f32 %v83_v13, %v261_v60  ;;  %v271_v41 = vand.u32 4294901760, %v90_v57  ;;  %v3397_v22 = vsub.f32 %v3360_v52, %v596_v19  ;;  %v89_v62 = vld [vmem:[#allocation2 + $0x1d0] sm:$0xff]  ;;  %v269_v52 = vand.u32 4294901760, %v87_v33 }
  0x51   :  { %5010 = vst [vmem:[#allocation84_spill] sm:$0xff] %v3379_v37  ;;  %v2620_v5 = vpack.c.bf16 %v4783_v9, %v5011_v34  ;;  %v3392_v44 = vpack.c.bf16 %v265_v0, %v261_v60  ;;  %v3394_v2 = vsub.f32 %v85_v4, %v265_v0  ;;  %v3400_v12 = vsub.f32 %v3364_v53, %v608_v18  ;;  %v94_v60 = vld [vmem:[#allocation2 + $0x1f8] sm:$0xff]  ;;  %v93_v30 = vld [vmem:[#allocation2 + $0x1f0] sm:$0xff] }
  0x52   :  { %5012 = vst [vmem:[#allocation85_spill] sm:$0xff] %v3389_v32  ;;  %5015 = vst [vmem:[#allocation88_spill] sm:$0xff] %v3397_v22  ;;  %v2622_v13 = vpack.c.bf16 %v608_v18, %v596_v19  ;;  %v3403_v9 = vpack.c.bf16 %v271_v41, %v267_v3  ;;  %v3405_v48 = vsub.f32 %v88_v59, %v267_v3  ;;  %v4794_v53 = vand.u32 4294901760, %v3379_v37  ;;  %v3433_v18 = vld [vmem:[%s4656_s0] sm:$0x7] }
  0x53   :  { %5013 = vst [vmem:[#allocation86_spill] sm:$0xff] %v3392_v44  ;;  %5014 = vst [vmem:[#allocation87_spill] sm:$0xff] %v3394_v2  ;;  %2621 = vmatprep.subr.bf16.mxu0 %v2620_v5  ;;  %2371 = vmatpush1.bf16.msra.mxu1 %v3392_v44  ;;  %v3409_v0 = vsub.f32 %v90_v57, %v271_v41  ;;  %v273_v34 = vand.u32 4294901760, %v89_v62  ;;  %v620_v5 = vand.u32 4294901760, %v3389_v32  ;;  %v632_v19 = vand.u32 4294901760, %v3394_v2  ;;  %v91_v44 = vld [vmem:[#allocation2 + $0x1e0] sm:$0xff] }
  0x54   :  { %5016 = vst [vmem:[#allocation89_spill] sm:$0xff] %v3403_v9  ;;  %5017 = vst [vmem:[#allocation90_spill] sm:$0xff] %v3405_v48  ;;  %2623 = vmatpush1.bf16.msra.mxu0 %v2622_v13  ;;  %2373 = vmatprep.subr.bf16.mxu1 %v3403_v9  ;;  %v275_v59 = vand.u32 4294901760, %v92_v20  ;;  %v5019_v3 = vand.u32 4294901760, %v3375_v56  ;;  %v3420_v41 = vsub.f32 %v87_v33, %v269_v52  ;;  %v279_v4 = vand.u32 4294901760, %v94_v60 }
  0x55   :  { %5018 = vst [vmem:[#allocation91_spill] sm:$0xff] %v3409_v0  ;;  %v3422_v13 = vpack.c.bf16 %v273_v34, %v269_v52  ;;  %v3424_v9 = vsub.f32 %v89_v62, %v273_v34  ;;  %v3427_v22 = vsub.f32 %v3389_v32, %v620_v5  ;;  %5024 = vst [vmem:[#allocation96_spill] sm:$0xff] %v3433_v18  ;;  %v4806_v11 = vand.u32 4294901760, %v3409_v0 }
  0x56   :  { %v2624_v57 = vpack.c.bf16 %v4794_v53, %v5019_v3  ;;  %5020 = vst [vmem:[#allocation92_spill] sm:$0xff] %v3420_v41  ;;  %v3436_v33 = vsub.f32 %v3394_v2, %v632_v19  ;;  %v2626_v3 = vpack.c.bf16 %v632_v19, %v620_v5  ;;  %v3438_v52 = vpack.c.bf16 %v279_v4, %v275_v59 }
  0x57   :  { %5021 = vst [vmem:[#allocation93_spill] sm:$0xff] %v3422_v13  ;;  %5022 = vst [vmem:[#allocation94_spill] sm:$0xff] %v3424_v9  ;;  %v3440_v62 = vsub.f32 %v92_v20, %v275_v59  ;;  %2375 = vmatpush1.bf16.msra.mxu1 %v3422_v13  ;;  %v3444_v53 = vsub.f32 %v94_v60, %v279_v4  ;;  %v277_v32 = vand.u32 4294901760, %v91_v44  ;;  %v644_v2 = vand.u32 4294901760, %v3420_v41 }
  0x58   :  { %5023 = vst [vmem:[#allocation95_spill] sm:$0xff] %v3427_v22  ;;  %2625 = vmatprep.subr.bf16.mxu0 %v2624_v57  ;;  %5025 = vst [vmem:[#allocation97_spill] sm:$0xff] %v3438_v52  ;;  %2377 = vmatprep.subr.bf16.mxu1 %v3438_v52  ;;  %v281_v57 = vand.u32 4294901760, %v93_v30  ;;  %v656_v5 = vand.u32 4294901760, %v3424_v9  ;;  %v5028_v20 = vsub.s32 1, %v2993_v1  ;;  %v5029_v59 = vand.u32 4294901760, %v3405_v48 }
  0x59   :  { %5026 = vst [vmem:[#allocation98_spill] sm:$0xff] %v3440_v62  ;;  %5027 = vst [vmem:[#allocation99_spill] sm:$0xff] %v3444_v53  ;;  %2627 = vmatpush1.bf16.msra.mxu0 %v2626_v3  ;;  %v3457_v4 = vsub.f32 %v91_v44, %v277_v32  ;;  %v5031_v3 = vand.u32 4294901760, %v3022_v35  ;;  %v5032_v34 = vand.u32 4294901760, %v3025_v36  ;;  %v4808_v13 = vand.u32 4294901760, %v3440_v62 }
  0x5a   :  { %v136_v19 = vrot.slane %v3433_v18, %v5028_v20  ;;  %v2628_v60 = vpack.c.bf16 %v4806_v11, %v5029_v59  ;;  %v3464_v22 = vpack.c.bf16 %v281_v57, %v277_v32  ;;  %v3466_v37 = vsub.f32 %v93_v30, %v281_v57 }
  0x5b   :  { %5030 = vst [vmem:[#allocation100_spill] sm:$0xff] %v3457_v4  ;;  %v2380_v52 = vpack.c.bf16 %v5032_v34, %v5031_v3  ;;  %v3469_v20 = vsub.f32 %v3420_v41, %v644_v2  ;;  %v3472_v48 = vsub.f32 %v3424_v9, %v656_v5  ;;  %v2630_v44 = vpack.c.bf16 %v656_v5, %v644_v2 }
  0x5c   :  { %5033 = vst [vmem:[#allocation101_spill] sm:$0xff] %v3464_v22  ;;  %5034 = vst [vmem:[#allocation102_spill] sm:$0xff] %v3466_v37  ;;  %2629 = vmatprep.subr.bf16.mxu0 %v2628_v60  ;;  %v3474_v59 = vand.u32 4294901760, %v136_v19  ;;  %v4807_v35 = vand.u32 4294901760, %v3444_v53  ;;  %v5035_v36 = vsub.s32 0, %v2993_v1  ;;  %2379 = vmatpush1.bf16.msra.mxu1 %v3464_v22  ;;  %v5036_v57 = vand.u32 4294901760, %v3043_v50 }
  0x5d   :  { %v5037_v3 = vand.u32 4294901760, %v3046_v51  ;;  %v668_v2 = vand.u32 4294901760, %v3457_v4  ;;  %2631 = vmatpush1.bf16.msra.mxu0 %v2630_v44  ;;  %2381 = vmatprep.subr.bf16.mxu1 %v2380_v52  ;;  %v680_v30 = vand.u32 4294901760, %v3466_v37  ;;  %v5039_v51 = vand.u32 4294901760, %v3006_v25 }
  0x5e   :  { %v132_v34 = vrot.slane %v3433_v18, %v5035_v36  ;;  %v3489_v5 = vsub.f32 %v136_v19, %v3474_v59  ;;  %v2632_v36 = vpack.c.bf16 %v4807_v35, %v4808_v13  ;;  %v5040_v19 = vand.u32 4294901760, %v3008_v26  ;;  %1294 = vmatprep.mubr.f32.mxu0 %v3474_v59 }
  0x5f   :  { %v2382_v60 = vpack.c.bf16 %v5037_v3, %v5036_v57  ;;  %v3499_v50 = vsub.f32 %v3457_v4, %v668_v2  ;;  %v327_v44 = vsub.f32 %v3006_v25, %v5039_v51  ;;  %v5041_v57 = vand.u32 4294901760, %v3067_v6 }
  0x60   :  { %5038 = vst [vmem:[#allocation103_spill] sm:$0xff] %v3489_v5  ;;  %v3495_v11 = vand.u32 4294901760, %v132_v34  ;;  %v339_v52 = vsub.f32 %v3008_v26, %v5040_v19  ;;  %v5042_v3 = vand.u32 4294901760, %v3076_v21  ;;  %v4812_v32 = vand.u32 4294901760, %v3489_v5  ;;  %2633 = vmatprep.subr.bf16.mxu0 %v2632_v36 }
  0x61   :  { %v2634_v51 = vpack.c.bf16 %v680_v30, %v668_v2  ;;  %v3520_v9 = vsub.f32 %v3466_v37, %v680_v30  ;;  %v328_v19 = vand.u32 4294901760, %v327_v44  ;;  %v5044_v6 = vand.u32 4294901760, %v3036_v46 }
  0x62   :  { %v3512_v35 = vpack.c.bf16 %v5042_v3, %v5041_v57  ;;  %v3517_v4 = vsub.f32 %v132_v34, %v3495_v11  ;;  %v340_v41 = vand.u32 4294901760, %v339_v52  ;;  %v286_v57 = vsub.f32 %v3489_v5, %v4812_v32 }
  0x63   :  { %v351_v21 = vsub.f32 %v3036_v46, %v5044_v6  ;;  %2635 = vmatpush1.bf16.msra.mxu0 %v2634_v51  ;;  %v5045_v34 = vand.u32 4294901760, %v3038_v47  ;;  %v5046_v52 = vand.u32 4294901760, %v3097_v55  ;;  %v5047_v6 = vand.u32 4294901760, %v3101_v58 }
  0x64   :  { %5043 = vst [vmem:[#allocation104_spill] sm:$0xff] %v3517_v4  ;;  %v2384_v2 = vpack.c.bf16 %v340_v41, %v328_v19  ;;  %2637 = vmatprep.subr.bf16.mxu0 %v2996_v17  ;;  %v5048_v32 = vand.u32 4294901760, %v3070_v10  ;;  %v287_v36 = vand.u32 4294901760, %v286_v57  ;;  %v5049_v51 = vand.u32 4294901760, %v3517_v4 }
  0x65   :  { %v363_v30 = vsub.f32 %v3038_v47, %v5045_v34  ;;  %v352_v44 = vand.u32 4294901760, %v351_v21  ;;  %v3538_v13 = vpack.c.bf16 %v5047_v6, %v5046_v52  ;;  %v5050_v41 = vand.u32 4294901760, %v3080_v27 }
  0x66   :  { %v375_v3 = vsub.f32 %v3070_v10, %v5048_v32  ;;  %v292_v37 = vsub.f32 %v3517_v4, %v5049_v51  ;;  %1296 = vmatmul.mubr.f32.vlgmr.msra.gmra.mrb[0].mxu0 %v3495_v11  ;;  %v5051_v58 = vand.u32 4294901760, %v3127_v15  ;;  %v5052_v21 = vand.u32 4294901760, %v3131_v54  ;;  %288 = vmatprep.mubr.f32.mxu1 %v287_v36 }
  0x67   :  { %v364_v34 = vand.u32 4294901760, %v363_v30  ;;  %v387_v19 = vsub.f32 %v3080_v27, %v5050_v41  ;;  %v5053_v32 = vand.u32 4294901760, %v3105_v63  ;;  %v5054_v6 = vand.u32 4294901760, %v3115_v29  ;;  %2639 = vmatpush1.bf16.msra.mxu0 %v3002_v23  ;;  %1431 = vmatprep.mubr.f32.mxu0 %v3474_v59  ;;  %v5081_v23 = vld [vmem:[#allocation52_spill] sm:$0xff] }
  0x68   :  { %v376_v55 = vand.u32 4294901760, %v375_v3  ;;  %v3554_v52 = vpack.c.bf16 %v5052_v21, %v5051_v58  ;;  %v293_v51 = vand.u32 4294901760, %v292_v37  ;;  %v5055_v15 = vand.u32 4294901760, %v3157_v45  ;;  %2641 = vmatprep.subr.bf16.mxu0 %v3004_v24 }
  0x69   :  { %v399_v57 = vsub.f32 %v3105_v63, %v5053_v32  ;;  %v411_v30 = vsub.f32 %v3115_v29, %v5054_v6  ;;  %v2388_v41 = vpack.c.bf16 %v364_v34, %v352_v44  ;;  %v388_v3 = vand.u32 4294901760, %v387_v19 }
  0x6a   :  { %v5056_v54 = vand.u32 4294901760, %v3160_v16  ;;  %v5057_v4 = vand.u32 4294901760, %v3135_v40  ;;  %v5058_v37 = vand.u32 4294901760, %v3139_v28  ;;  %294 = vmatmul.mubr.f32.vlgmr.msra.gmra.mrb[0].mxu1 %v293_v51  ;;  %v5059_v16 = vand.u32 4294901760, %v3187_v39 }
  0x6b   :  { %v400_v21 = vand.u32 4294901760, %v399_v57  ;;  %v412_v32 = vand.u32 4294901760, %v411_v30  ;;  %v2392_v45 = vpack.c.bf16 %v388_v3, %v376_v55  ;;  %v5060_v44 = vand.u32 4294901760, %v3191_v31  ;;  %2383 = vmatpush1.bf16.msra.mxu1 %v2382_v60  ;;  %685 = vmatprep.mubr.f32.mxu1 %v3474_v59 }
  0x6c   :  { %v3567_v58 = vpack.c.bf16 %v5056_v54, %v5055_v15  ;;  %v423_v6 = vsub.f32 %v3135_v40, %v5057_v4  ;;  %v435_v36 = vsub.f32 %v3139_v28, %v5058_v37  ;;  %v5061_v19 = vand.u32 4294901760, %v3165_v7  ;;  %2385 = vmatprep.subr.bf16.mxu1 %v2384_v2  ;;  %2643 = vmatpush1.bf16.msra.mxu0 %v3027_v38  ;;  %v5075_v38 = vld [vmem:[#allocation56_spill] sm:$0xff] }
  0x6d   :  { %v3581_v34 = vpack.c.bf16 %v5060_v44, %v5059_v16  ;;  %v5062_v4 = vand.u32 4294901760, %v3169_v43  ;;  %v3589_v15 = vpack.c.bf16 %v412_v32, %v400_v21  ;;  %v5063_v55 = vand.u32 4294901760, %v3217_v49  ;;  %2645 = vmatprep.subr.bf16.mxu0 %v3033_v42  ;;  %v5067_v49 = vld [vmem:[#allocation48_spill] sm:$0xff]  ;;  %v5071_v44 = vld [vmem:[#allocation43_spill] sm:$0xff] }
  0x6e   :  { %v447_v57 = vsub.f32 %v3165_v7, %v5061_v19  ;;  %v424_v54 = vand.u32 4294901760, %v423_v6  ;;  %v436_v51 = vand.u32 4294901760, %v435_v36  ;;  %v5064_v39 = vand.u32 4294901760, %v3220_v8  ;;  %v5069_v36 = vld [vmem:[#allocation49_spill] sm:$0xff] }
  0x6f   :  { %v459_v30 = vsub.f32 %v3169_v43, %v5062_v4  ;;  %v5065_v16 = vand.u32 4294901760, %v3195_v61  ;;  %v5066_v21 = vand.u32 4294901760, %v3199_v14  ;;  %v5068_v6 = vand.u32 4294901760, %v5067_v49  ;;  %v5073_v4 = vld [vmem:[#allocation44_spill] sm:$0xff]  ;;  %2387 = vmatpush1.bf16.msra.mxu1 %v3512_v35  ;;  %v5086_v35 = vld [vmem:[#allocation65_spill] sm:$0xff] }
  0x70   :  { %v3595_v31 = vpack.c.bf16 %v5064_v39, %v5063_v55  ;;  %v448_v3 = vand.u32 4294901760, %v447_v57  ;;  %v2400_v8 = vpack.c.bf16 %v436_v51, %v424_v54  ;;  %v5070_v59 = vand.u32 4294901760, %v5069_v36  ;;  %v5077_v54 = vld [vmem:[#allocation57_spill] sm:$0xff]  ;;  %2389 = vmatprep.subr.bf16.mxu1 %v2388_v41 }
  0x71   :  { %v460_v37 = vand.u32 4294901760, %v459_v30  ;;  %v471_v60 = vsub.f32 %v3195_v61, %v5065_v16  ;;  %v483_v32 = vsub.f32 %v3199_v14, %v5066_v21  ;;  %v5072_v19 = vand.u32 4294901760, %v5071_v44 }
  0x72   :  { %v3610_v2 = vpack.c.bf16 %v5070_v59, %v5068_v6  ;;  %v5074_v30 = vand.u32 4294901760, %v5073_v4  ;;  %v5076_v42 = vand.u32 4294901760, %v5075_v38  ;;  %v5078_v51 = vand.u32 4294901760, %v5077_v54  ;;  %v5079_v59 = vld [vmem:[#allocation51_spill] sm:$0xff]  ;;  %v5083_v38 = vld [vmem:[#allocation17_spill] sm:$0xff] }
  0x73   :  { %v495_v57 = vsub.f32 %v5071_v44, %v5072_v19  ;;  %v2404_v39 = vpack.c.bf16 %v460_v37, %v448_v3  ;;  %v472_v16 = vand.u32 4294901760, %v471_v60  ;;  %v484_v21 = vand.u32 4294901760, %v483_v32  ;;  %2647 = vmatpush1.bf16.msra.mxu0 %v5083_v38  ;;  %2391 = vmatpush1.bf16.msra.mxu1 %v3538_v13 }
  0x74   :  { %v507_v55 = vsub.f32 %v5073_v4, %v5074_v30  ;;  %v3622_v49 = vpack.c.bf16 %v5078_v51, %v5076_v42  ;;  %v5080_v24 = vand.u32 4294901760, %v5079_v59  ;;  %v5082_v17 = vand.u32 4294901760, %v5081_v23  ;;  %v5084_v42 = vld [vmem:[#allocation64_spill] sm:$0xff]  ;;  %v5097_v4 = vld [vmem:[#allocation67_spill] sm:$0xff]  ;;  %2393 = vmatprep.subr.bf16.mxu1 %v2392_v45 }
  0x75   :  { %v496_v6 = vand.u32 4294901760, %v495_v57  ;;  %v682_v37 = vand.u32 4294901760, %v3520_v9  ;;  %v3633_v60 = vpack.c.bf16 %v484_v21, %v472_v16  ;;  %v5085_v32 = vand.u32 4294901760, %v5084_v42  ;;  %v5090_v51 = vld [vmem:[#allocation20_spill] sm:$0xff] }
  0x76   :  { %v508_v36 = vand.u32 4294901760, %v507_v55  ;;  %v519_v19 = vsub.f32 %v5079_v59, %v5080_v24  ;;  %v531_v3 = vsub.f32 %v5081_v23, %v5082_v17  ;;  %v5087_v57 = vand.u32 4294901760, %v5086_v35  ;;  %v5088_v55 = vld [vmem:[#allocation59_spill] sm:$0xff]  ;;  %2649 = vmatprep.subr.bf16.mxu0 %v5090_v51  ;;  %v5091_v23 = vld [vmem:[#allocation60_spill] sm:$0xff]  ;;  %v5095_v35 = vld [vmem:[#allocation73_spill] sm:$0xff] }
  0x77   :  { %v5089_v54 = vand.u32 4294901760, %v5088_v55  ;;  %v5092_v38 = vand.u32 4294901760, %v5091_v23  ;;  %v5093_v42 = vld [vmem:[#allocation72_spill] sm:$0xff]  ;;  %v5098_v44 = vand.u32 4294901760, %v5097_v4  ;;  %v5114_v45 = vand.u32 4294901760, %v3375_v56  ;;  %2395 = vmatpush1.bf16.msra.mxu1 %v3554_v52 }
  0x78   :  { %v3639_v30 = vpack.c.bf16 %v5087_v57, %v5085_v32  ;;  %v3645_v17 = vpack.c.bf16 %v508_v36, %v496_v6  ;;  %v520_v9 = vand.u32 4294901760, %v519_v19  ;;  %v532_v41 = vand.u32 4294901760, %v531_v3  ;;  %v5099_v51 = vld [vmem:[#allocation68_spill] sm:$0xff]  ;;  %2397 = vmatprep.subr.bf16.mxu1 %v3589_v15  ;;  %v5127_v15 = vld [vmem:[#allocation90_spill] sm:$0xff] }
  0x79   :  { %v543_v24 = vsub.f32 %v5088_v55, %v5089_v54  ;;  %v555_v16 = vsub.f32 %v5091_v23, %v5092_v38  ;;  %v5094_v59 = vand.u32 4294901760, %v5093_v42  ;;  %v5096_v32 = vand.u32 4294901760, %v5095_v35  ;;  %v5101_v38 = vld [vmem:[#allocation80_spill] sm:$0xff]  ;;  %v5103_v42 = vld [vmem:[#allocation81_spill] sm:$0xff] }
  0x7a   :  { %v567_v54 = vsub.f32 %v5097_v4, %v5098_v44  ;;  %v5100_v6 = vand.u32 4294901760, %v5099_v51  ;;  %v3663_v19 = vpack.c.bf16 %v532_v41, %v520_v9  ;;  %v5104_v23 = vand.u32 4294901760, %v5103_v42  ;;  %v5107_v44 = vld [vmem:[#allocation22_spill] sm:$0xff]  ;;  %v5110_v41 = vld [vmem:[#allocation88_spill] sm:$0xff] }
  0x7b   :  { %v544_v21 = vand.u32 4294901760, %v543_v24  ;;  %v3654_v57 = vpack.c.bf16 %v5096_v32, %v5094_v59  ;;  %v556_v3 = vand.u32 4294901760, %v555_v16  ;;  %v5102_v24 = vand.u32 4294901760, %v5101_v38  ;;  %v5105_v59 = vld [vmem:[#allocation75_spill] sm:$0xff]  ;;  %2651 = vmatpush1.bf16.msra.mxu0 %v5107_v44  ;;  %2399 = vmatpush1.bf16.msra.mxu1 %v3567_v58 }
  0x7c   :  { %v579_v36 = vsub.f32 %v5099_v51, %v5100_v6  ;;  %v5106_v32 = vand.u32 4294901760, %v5105_v59  ;;  %v568_v4 = vand.u32 4294901760, %v567_v54  ;;  %v5108_v51 = vld [vmem:[#allocation76_spill] sm:$0xff]  ;;  %v5111_v16 = vand.u32 4294901760, %v5110_v41  ;;  %2401 = vmatprep.subr.bf16.mxu1 %v2400_v8 }
  0x7d   :  { %v3669_v35 = vpack.c.bf16 %v5104_v23, %v5102_v24  ;;  %v5109_v13 = vand.u32 4294901760, %v5108_v51  ;;  %v5112_v38 = vand.u32 4294901760, %v3400_v12  ;;  %v5113_v23 = vld [vmem:[#allocation24_spill] sm:$0xff]  ;;  %v3685_v24 = vpack.c.bf16 %v556_v3, %v544_v21 }
  0x7e   :  { %v591_v55 = vsub.f32 %v5105_v59, %v5106_v32  ;;  %v580_v6 = vand.u32 4294901760, %v579_v36  ;;  %2653 = vmatprep.subr.bf16.mxu0 %v5113_v23  ;;  %v615_v54 = vsub.f32 %v3375_v56, %v5114_v45  ;;  %v5115_v36 = vld [vmem:[#allocation84_spill] sm:$0xff]  ;;  %v5120_v3 = vand.u32 4294901760, %v3469_v20  ;;  %v5163_v56 = vld [vmem:[#allocation50_spill] sm:$0xff] }
  0x7f   :  { %v603_v9 = vsub.f32 %v5108_v51, %v5109_v13  ;;  %v3682_v42 = vpack.c.bf16 %v5112_v38, %v5111_v16  ;;  %v5116_v44 = vand.u32 4294901760, %v5115_v36  ;;  %v5117_v51 = vld [vmem:[#allocation95_spill] sm:$0xff]  ;;  %v5119_v16 = vand.u32 4294901760, %v3436_v33  ;;  %v5126_v20 = vld [vmem:[#allocation32_spill] sm:$0xff]  ;;  %2403 = vmatpush1.bf16.msra.mxu1 %v3581_v34 }
  0x80   :  { %v592_v32 = vand.u32 4294901760, %v591_v55  ;;  %v3693_v13 = vpack.c.bf16 %v580_v6, %v568_v4  ;;  %v5118_v12 = vand.u32 4294901760, %v5117_v51  ;;  %v616_v55 = vand.u32 4294901760, %v615_v54  ;;  %v5122_v4 = vld [vmem:[#allocation26_spill] sm:$0xff]  ;;  %v5123_v51 = vld [vmem:[#allocation28_spill] sm:$0xff]  ;;  %2405 = vmatprep.subr.bf16.mxu1 %v2404_v39 }
  0x81   :  { %v627_v59 = vsub.f32 %v5115_v36, %v5116_v44  ;;  %v604_v41 = vand.u32 4294901760, %v603_v9  ;;  %v5121_v45 = vand.u32 4294901760, %v3472_v48  ;;  %2655 = vmatpush1.bf16.msra.mxu0 %v5122_v4  ;;  %v5124_v52 = vand.u32 4294901760, %v3499_v50  ;;  %v5125_v48 = vld [vmem:[#allocation30_spill] sm:$0xff]  ;;  %v5133_v34 = vld [vmem:[#allocation36_spill] sm:$0xff]  ;;  %v3792_v4 = vld [vmem:[#allocation2 + $0x250] sm:$0xff] }
  0x82   :  { %v3699_v38 = vpack.c.bf16 %v5119_v16, %v5118_v12  ;;  %2657 = vmatprep.subr.bf16.mxu0 %v5123_v51  ;;  %v3729_v50 = vld [vmem:[#allocation2 + $0x208] sm:$0xff]  ;;  %v5131_v58 = vand.u32 4294901760, %v3440_v62  ;;  %v3738_v12 = vld [vmem:[#allocation2 + $0x200] sm:$0xff]  ;;  %v3740_v16 = vld [vmem:[#allocation2 + $0x210] sm:$0xff] }
  0x83   :  { %v628_v21 = vand.u32 4294901760, %v627_v59  ;;  %v3706_v23 = vpack.c.bf16 %v5121_v45, %v5120_v3  ;;  %v3710_v44 = vpack.c.bf16 %v604_v41, %v592_v32  ;;  %v3717_v6 = vpack.c.bf16 %v682_v37, %v5124_v52  ;;  %v5130_v37 = vld [vmem:[#allocation34_spill] sm:$0xff]  ;;  %v3735_v41 = vld [vmem:[#allocation2 + $0x218] sm:$0xff]  ;;  %5134 = vst [vmem:[#allocation49_spill] sm:$0xff] %v3738_v12  ;;  %5135 = vst [vmem:[#allocation56_spill] sm:$0xff] %v3740_v16 }
  0x84   :  { %v5128_v59 = vand.u32 4294901760, %v5127_v15  ;;  %v5129_v32 = vand.u32 4294901760, %v3409_v0  ;;  %v663_v8 = vsub.f32 %v3440_v62, %v5131_v58  ;;  %5132 = vst [vmem:[#allocation48_spill] sm:$0xff] %v3735_v41  ;;  %v3748_v45 = vld [vmem:[#allocation2 + $0x238] sm:$0xff]  ;;  %v3750_v52 = vld [vmem:[#allocation2 + $0x220] sm:$0xff]  ;;  %2407 = vmatpush1.bf16.msra.mxu1 %v3595_v31  ;;  %v5146_v31 = vld [vmem:[#allocation42_spill] sm:$0xff] }
  0x85   :  { %v3713_v33 = vpack.c.bf16 %v628_v21, %v616_v55  ;;  %2659 = vmatpush1.bf16.msra.mxu0 %v5125_v48  ;;  %v3742_v55 = vld [vmem:[#allocation2 + $0x228] sm:$0xff]  ;;  %v5137_v21 = vand.u32 4294901760, %v3444_v53  ;;  %5138 = vst [vmem:[#allocation64_spill] sm:$0xff] %v3748_v45  ;;  %5139 = vst [vmem:[#allocation65_spill] sm:$0xff] %v3750_v52  ;;  %2409 = vmatprep.subr.bf16.mxu1 %v3633_v60  ;;  %v5143_v48 = vld [vmem:[#allocation8_spill] sm:$0xff] }
  0x86   :  { %2661 = vmatprep.subr.bf16.mxu0 %v5126_v20  ;;  %v639_v9 = vsub.f32 %v5127_v15, %v5128_v59  ;;  %v651_v54 = vsub.f32 %v3409_v0, %v5129_v32  ;;  %5136 = vst [vmem:[#allocation57_spill] sm:$0xff] %v3742_v55  ;;  %v3752_v59 = vld [vmem:[#allocation2 + $0x230] sm:$0xff]  ;;  %v664_v20 = vand.u32 4294901760, %v663_v8  ;;  %v3764_v62 = vld [vmem:[#allocation2 + $0x258] sm:$0xff]  ;;  %v5149_v0 = vand.u32 4294901760, %v3729_v50  ;;  %v3790_v60 = vld [vmem:[#allocation2 + $0x240] sm:$0xff] }
  0x87   :  { %v675_v39 = vsub.f32 %v3444_v53, %v5137_v21  ;;  %5140 = vst [vmem:[#allocation72_spill] sm:$0xff] %v3752_v59  ;;  %v5142_v21 = vld [vmem:[#allocation7_spill] sm:$0xff]  ;;  %v3762_v53 = vld [vmem:[#allocation2 + $0x248] sm:$0xff]  ;;  %5145 = vst [vmem:[#allocation80_spill] sm:$0xff] %v3764_v62 }
  0x88   :  { %v640_v32 = vand.u32 4294901760, %v639_v9  ;;  %v652_v58 = vand.u32 4294901760, %v651_v54  ;;  %5144 = vst [vmem:[#allocation73_spill] sm:$0xff] %v3762_v53  ;;  %v5147_v3 = vld [vmem:[#allocation12_spill] sm:$0xff]  ;;  %v3778_v15 = vsub.f32 %v3729_v50, %v5149_v0  ;;  %2411 = vmatpush1.bf16.msra.mxu1 %v3610_v2  ;;  %v5151_v54 = vand.u32 4294901760, %v3735_v41  ;;  %5153 = vst [vmem:[#allocation95_spill] sm:$0xff] %v3790_v60 }
  0x89   :  { %2663 = vmatpush1.bf16.msra.mxu0 %v5130_v37  ;;  %v5141_v37 = vld [vmem:[#allocation40_spill] sm:$0xff]  ;;  %5154 = vst [vmem:[#allocation7_spill] sm:$0xff] %v3792_v4  ;;  %2413 = vmatprep.subr.bf16.mxu1 %v3645_v17  ;;  %v5155_v0 = vld [vmem:[#allocation46_spill] sm:$0xff]  ;;  %v5156_v2 = vld [vmem:[#allocation11_spill] sm:$0xff]  ;;  %v5164_v17 = vand.u32 4294901760, %v3742_v55 }
  0x8a   :  { %2665 = vmatprep.subr.bf16.mxu0 %v5133_v34  ;;  %v676_v34 = vand.u32 4294901760, %v675_v39  ;;  %5150 = vst [vmem:[#allocation81_spill] sm:$0xff] %v3778_v15  ;;  %v3781_v9 = vpack.c.bf16 %v652_v58, %v640_v32  ;;  %v3786_v8 = vsub.f32 %v3735_v41, %v5151_v54  ;;  %v5157_v32 = vld [vmem:[#allocation15_spill] sm:$0xff]  ;;  %v5160_v39 = vand.u32 4294901760, %v3740_v16  ;;  %v3808_v36 = vld [vmem:[#allocation2 + $0x268] sm:$0xff] }
  0x8b   :  { %v5166_v58 = vand.u32 4294901760, %v3748_v45 }
  0x8c   :  { %5152 = vst [vmem:[#allocation88_spill] sm:$0xff] %v3786_v8  ;;  %v3806_v51 = vsub.f32 %v3740_v16, %v5160_v39  ;;  %v5170_v39 = vand.u32 4294901760, %v3752_v59  ;;  %v3833_v16 = vpack.c.bf16 %v676_v34, %v664_v20  ;;  %2415 = vmatpush1.bf16.msra.mxu1 %v3622_v49 }
  0x8d   :  { %2667 = vmatpush1.bf16.msra.mxu0 %v5141_v37  ;;  %v5148_v37 = vld [vmem:[#allocation13_spill] sm:$0xff]  ;;  %v3819_v14 = vsub.f32 %v3748_v45, %v5166_v58  ;;  %2417 = vmatprep.subr.bf16.mxu1 %v3663_v19  ;;  %v5182_v58 = vand.u32 4294901760, %v3790_v60  ;;  %v5186_v19 = vand.u32 4294901760, %v3786_v8 }
  0x8e   :  { %2669 = vmatprep.subr.bf16.mxu0 %v5146_v31  ;;  %v5158_v31 = vand.u32 4294901760, %v3738_v12  ;;  %5161 = vst [vmem:[#allocation12_spill] sm:$0xff] %v3806_v51  ;;  %5162 = vst [vmem:[#allocation13_spill] sm:$0xff] %v3808_v36  ;;  %v3829_v18 = vsub.f32 %v3752_v59, %v5170_v39  ;;  %v5175_v39 = vand.u32 4294901760, %v3764_v62 }
  0x8f   :  { %5167 = vst [vmem:[#allocation15_spill] sm:$0xff] %v3819_v14  ;;  %v1562_v34 = vsub.f32 %v3786_v8, %v5186_v19  ;;  %v5191_v19 = vand.u32 4294901760, %v3806_v51 }
  0x90   :  { %v3801_v54 = vsub.f32 %v3738_v12, %v5158_v31  ;;  %v5168_v31 = vand.u32 4294901760, %v3750_v52  ;;  %5171 = vst [vmem:[#allocation106_spill] sm:$0xff] %v3829_v18  ;;  %v3848_v20 = vsub.f32 %v3764_v62, %v5175_v39  ;;  %v5184_v39 = vand.u32 4294901760, %v3792_v4  ;;  %2419 = vmatpush1.bf16.msra.mxu1 %v3639_v30 }
  0x91   :  { %2671 = vmatpush1.bf16.msra.mxu0 %v5155_v0  ;;  %v3814_v0 = vsub.f32 %v3742_v55, %v5164_v17  ;;  %v5177_v55 = vld [vmem:[#allocation54_spill] sm:$0xff]  ;;  %2421 = vmatprep.subr.bf16.mxu1 %v3685_v24 }
  0x92   :  { %5159 = vst [vmem:[#allocation8_spill] sm:$0xff] %v3801_v54  ;;  %2673 = vmatprep.subr.bf16.mxu0 %v5163_v56  ;;  %v3824_v61 = vsub.f32 %v3750_v52, %v5168_v31  ;;  %v3831_v56 = vld [vmem:[#allocation2 + $0x278] sm:$0xff]  ;;  %v5173_v52 = vand.u32 4294901760, %v3762_v53  ;;  %5176 = vst [vmem:[#allocation109_spill] sm:$0xff] %v3848_v20  ;;  %v5178_v17 = vld [vmem:[#allocation58_spill] sm:$0xff]  ;;  %v3876_v62 = vsub.f32 %v3792_v4, %v5184_v39  ;;  %v5190_v30 = vand.u32 4294901760, %v3801_v54 }
  0x93   :  { %5165 = vst [vmem:[#allocation11_spill] sm:$0xff] %v3814_v0  ;;  %5172 = vst [vmem:[#allocation107_spill] sm:$0xff] %v3831_v56  ;;  %v5180_v31 = vld [vmem:[#allocation18_spill] sm:$0xff]  ;;  %v5192_v59 = vand.u32 4294901760, %v3831_v56  ;;  %v5195_v24 = vand.u32 4294901760, %v3814_v0 }
  0x94   :  { %5169 = vst [vmem:[#allocation105_spill] sm:$0xff] %v3824_v61  ;;  %v3843_v45 = vsub.f32 %v3762_v53, %v5173_v52  ;;  %v5181_v53 = vld [vmem:[#allocation19_spill] sm:$0xff]  ;;  %v3871_v52 = vsub.f32 %v3790_v60, %v5182_v58  ;;  %v5189_v39 = vld [vmem:[#allocation62_spill] sm:$0xff]  ;;  %v1556_v4 = vsub.f32 %v3801_v54, %v5190_v30  ;;  %v5196_v60 = vand.u32 4294901760, %v3819_v14  ;;  %2423 = vmatpush1.bf16.msra.mxu1 %v3654_v57  ;;  %v3961_v57 = vld [vmem:[#allocation2 + $0x298] sm:$0xff] }
  0x95   :  { %2675 = vmatpush1.bf16.msra.mxu0 %v5177_v55  ;;  %v5179_v55 = vand.u32 4294901760, %v3778_v15  ;;  %5185 = vst [vmem:[#allocation19_spill] sm:$0xff] %v3876_v62  ;;  %v3902_v8 = vsub.f32 %v3831_v56, %v5192_v59  ;;  %v5197_v54 = vand.u32 4294901760, %v3824_v61  ;;  %2425 = vmatprep.subr.bf16.mxu1 %v3693_v13 }
  0x96   :  { %5174 = vst [vmem:[#allocation108_spill] sm:$0xff] %v3843_v45  ;;  %2677 = vmatprep.subr.bf16.mxu0 %v5178_v17  ;;  %5183 = vst [vmem:[#allocation18_spill] sm:$0xff] %v3871_v52  ;;  %v5187_v17 = vand.u32 4294901760, %v3808_v36  ;;  %v1586_v30 = vsub.f32 %v3819_v14, %v5196_v60  ;;  %v5200_v14 = vand.u32 4294901760, %v3848_v20  ;;  %v1557_v1 = vand.u32 4294901760, %v1556_v4 }
  0x97   :  { %v1550_v49 = vsub.f32 %v3778_v15, %v5179_v55  ;;  %v3889_v15 = vld [vmem:[#allocation2 + $0x260] sm:$0xff]  ;;  %v1568_v55 = vsub.f32 %v3806_v51, %v5191_v19  ;;  %5193 = vst [vmem:[#allocation111_spill] sm:$0xff] %v3902_v8  ;;  %v1580_v19 = vsub.f32 %v3824_v61, %v5197_v54  ;;  %v5198_v51 = vand.u32 4294901760, %v3829_v18 }
  0x98   :  { %v3887_v58 = vsub.f32 %v3808_v36, %v5187_v17  ;;  %v3904_v17 = vld [vmem:[#allocation2 + $0x270] sm:$0xff]  ;;  %v5194_v36 = vld [vmem:[#allocation66_spill] sm:$0xff]  ;;  %v1610_v54 = vsub.f32 %v3848_v20, %v5200_v14  ;;  %v5204_v61 = vand.u32 4294901760, %v3876_v62  ;;  %2427 = vmatpush1.bf16.msra.mxu1 %v3669_v35 }
  0x99   :  { %2679 = vmatpush1.bf16.msra.mxu0 %v5189_v39  ;;  %v1574_v39 = vsub.f32 %v3814_v0, %v5195_v24  ;;  %v1592_v59 = vsub.f32 %v3829_v18, %v5198_v51  ;;  %v1551_v56 = vand.u32 4294901760, %v1550_v49  ;;  %v5199_v24 = vand.u32 4294901760, %v3843_v45  ;;  %v5201_v49 = vld [vmem:[#allocation70_spill] sm:$0xff]  ;;  %2429 = vmatprep.subr.bf16.mxu1 %v3710_v44 }
  0x9a   :  { %5188 = vst [vmem:[#allocation110_spill] sm:$0xff] %v3887_v58  ;;  %2681 = vmatprep.subr.bf16.mxu0 %v5194_v36  ;;  %v1563_v36 = vand.u32 4294901760, %v1562_v34  ;;  %v1569_v12 = vand.u32 4294901760, %v1568_v55  ;;  %v5202_v18 = vld [vmem:[#allocation74_spill] sm:$0xff]  ;;  %v1581_v0 = vand.u32 4294901760, %v1580_v19  ;;  %v5203_v51 = vand.u32 4294901760, %v3871_v52 }
  0x9b   :  { %v1598_v60 = vsub.f32 %v3843_v45, %v5199_v24  ;;  %v1575_v24 = vand.u32 4294901760, %v1574_v39  ;;  %v1587_v45 = vand.u32 4294901760, %v1586_v30  ;;  %v1593_v41 = vand.u32 4294901760, %v1592_v59  ;;  %v3948_v39 = vld [vmem:[#allocation2 + $0x288] sm:$0xff] }
  0x9c   :  { %v1604_v13 = vsub.f32 %v3871_v52, %v5203_v51  ;;  %v1616_v4 = vsub.f32 %v3876_v62, %v5204_v61  ;;  %v5205_v34 = vand.u32 4294901760, %v3889_v15  ;;  %v1611_v19 = vand.u32 4294901760, %v1610_v54  ;;  %v3988_v62 = vld [vmem:[#allocation2 + $0x2b8] sm:$0xff]  ;;  %2431 = vmatpush1.bf16.msra.mxu1 %v3682_v42 }
  0x9d   :  { %2683 = vmatpush1.bf16.msra.mxu0 %v5201_v49  ;;  %v1599_v30 = vand.u32 4294901760, %v1598_v60  ;;  %v5207_v59 = vand.u32 4294901760, %v3887_v58  ;;  %v5208_v51 = vand.u32 4294901760, %v3904_v17  ;;  %v3967_v35 = vpack.c.bf16 %v1569_v12, %v1557_v1  ;;  %v3976_v49 = vld [vmem:[#allocation2 + $0x290] sm:$0xff]  ;;  %v3986_v12 = vld [vmem:[#allocation2 + $0x2a8] sm:$0xff]  ;;  %5218 = vst [vmem:[#allocation117_spill] sm:$0xff] %v3988_v62  ;;  %2433 = vmatprep.subr.bf16.mxu1 %v3713_v33 }
  0x9e   :  { %2685 = vmatprep.subr.bf16.mxu0 %v5202_v18  ;;  %v3946_v55 = vsub.f32 %v3889_v15, %v5205_v34  ;;  %v5210_v34 = vld [vmem:[#allocation78_spill] sm:$0xff]  ;;  %v3965_v18 = vpack.c.bf16 %v1563_v36, %v1551_v56  ;;  %v5211_v60 = vand.u32 4294901760, %v3902_v8  ;;  %5213 = vst [vmem:[#allocation115_spill] sm:$0xff] %v3976_v49  ;;  %v3981_v44 = vpack.c.bf16 %v1593_v41, %v1581_v0  ;;  %v5224_v1 = vld [vmem:[#allocation89_spill] sm:$0xff] }
  0x9f   :  { %v3954_v14 = vsub.f32 %v3887_v58, %v5207_v59  ;;  %v3959_v61 = vsub.f32 %v3904_v17, %v5208_v51  ;;  %v3974_v59 = vld [vmem:[#allocation2 + $0x280] sm:$0xff]  ;;  %v5214_v51 = vld [vmem:[#allocation82_spill] sm:$0xff]  ;;  %v3979_v58 = vpack.c.bf16 %v1587_v45, %v1575_v24  ;;  %5217 = vst [vmem:[#allocation116_spill] sm:$0xff] %v3986_v12  ;;  %v1617_v52 = vand.u32 4294901760, %v1616_v4  ;;  %v3994_v24 = vld [vmem:[#allocation2 + $0x2b0] sm:$0xff] }
  0xa0   :  { %5206 = vst [vmem:[#allocation112_spill] sm:$0xff] %v3946_v55  ;;  %v3972_v54 = vsub.f32 %v3902_v8, %v5211_v60  ;;  %5212 = vst [vmem:[#allocation114_spill] sm:$0xff] %v3974_v59  ;;  %v3990_v60 = vld [vmem:[#allocation2 + $0x2a0] sm:$0xff]  ;;  %v1605_v8 = vand.u32 4294901760, %v1604_v13  ;;  %v3996_v41 = vld [vmem:[#allocation2 + $0x2c8] sm:$0xff]  ;;  %v3999_v0 = vpack.c.bf16 %v1611_v19, %v1599_v30  ;;  %v5226_v30 = vand.u32 4294901760, %v3946_v55  ;;  %2435 = vmatpush1.bf16.msra.mxu1 %v3699_v38 }
  0xa1   :  { %5209 = vst [vmem:[#allocation113_spill] sm:$0xff] %v3959_v61  ;;  %2687 = vmatpush1.bf16.msra.mxu0 %v5210_v34  ;;  %5219 = vst [vmem:[#allocation118_spill] sm:$0xff] %v3990_v60  ;;  %v1623_v36 = vand.u32 4294901760, %v3954_v14  ;;  %v4004_v13 = vld [vmem:[#allocation2 + $0x2d8] sm:$0xff]  ;;  %v5222_v4 = vld [vmem:[#allocation86_spill] sm:$0xff]  ;;  %2437 = vmatprep.subr.bf16.mxu1 %v3781_v9  ;;  %v5233_v38 = vand.u32 4294901760, %v3976_v49 }
  0xa2   :  { %2689 = vmatprep.subr.bf16.mxu0 %v5214_v51  ;;  %5220 = vst [vmem:[#allocation119_spill] sm:$0xff] %v3994_v24  ;;  %5221 = vst [vmem:[#allocation120_spill] sm:$0xff] %v3996_v41  ;;  %v1635_v45 = vand.u32 4294901760, %v3972_v54  ;;  %v4012_v19 = vld [vmem:[#allocation2 + $0x2c0] sm:$0xff]  ;;  %v4014_v14 = vld [vmem:[#allocation2 + $0x2d0] sm:$0xff]  ;;  %v5225_v51 = vand.u32 4294901760, %v3948_v39  ;;  %v4025_v42 = vpack.c.bf16 %v1617_v52, %v1605_v8  ;;  %v4030_v34 = vsub.f32 %v3946_v55, %v5226_v30 }
  0xa3   :  { %5223 = vst [vmem:[#allocation121_spill] sm:$0xff] %v4012_v19  ;;  %v5229_v54 = vand.u32 4294901760, %v3959_v61  ;;  %v5230_v8 = vand.u32 4294901760, %v3974_v59  ;;  %v4070_v9 = vld [vmem:[#allocation2 + $0x2f8] sm:$0xff] }
  0xa4   :  { %v4020_v33 = vsub.f32 %v3948_v39, %v5225_v51  ;;  %v4056_v51 = vsub.f32 %v3976_v49, %v5233_v38  ;;  %v5238_v38 = vand.u32 4294901760, %v3990_v60  ;;  %2439 = vmatpush1.bf16.msra.mxu1 %v3706_v23 }
  0xa5   :  { %2691 = vmatpush1.bf16.msra.mxu0 %v5222_v4  ;;  %v4042_v20 = vsub.f32 %v3959_v61, %v5229_v54  ;;  %v4047_v52 = vsub.f32 %v3974_v59, %v5230_v8  ;;  %v5234_v54 = vand.u32 4294901760, %v3986_v12  ;;  %v5235_v8 = vand.u32 4294901760, %v3988_v62  ;;  %v4068_v4 = vld [vmem:[#allocation2 + $0x2e8] sm:$0xff]  ;;  %2441 = vmatprep.subr.bf16.mxu1 %v3833_v16 }
  0xa6   :  { %2693 = vmatprep.subr.bf16.mxu0 %v5224_v1  ;;  %v5227_v1 = vand.u32 4294901760, %v3961_v57  ;;  %v4077_v49 = vsub.f32 %v3990_v60, %v5238_v38  ;;  %v5245_v38 = vand.u32 4294901760, %v4012_v19 }
  0xa7   :  { %5231 = vst [vmem:[#allocation123_spill] sm:$0xff] %v4047_v52  ;;  %v4061_v61 = vsub.f32 %v3986_v12, %v5234_v54  ;;  %v4066_v30 = vsub.f32 %v3988_v62, %v5235_v8  ;;  %v5240_v54 = vand.u32 4294901760, %v3994_v24  ;;  %v5242_v8 = vand.u32 4294901760, %v3996_v41 }
  0xa8   :  { %v4035_v56 = vsub.f32 %v3961_v57, %v5227_v1  ;;  %v5232_v1 = vld [vmem:[#allocation93_spill] sm:$0xff]  ;;  %5239 = vst [vmem:[#allocation125_spill] sm:$0xff] %v4077_v49  ;;  %v4098_v60 = vsub.f32 %v4012_v19, %v5245_v38  ;;  %v4128_v19 = vld [vmem:[#allocation2 + $0x2f0] sm:$0xff]  ;;  %2443 = vmatpush1.bf16.msra.mxu1 %v3717_v6  ;;  %v5254_v6 = vpack.c.bf16 %v5143_v48, %v5142_v21  ;;  %v5258_v48 = vand.u32 4294901760, %v4077_v49 }
  0xa9   :  { %2695 = vmatpush1.bf16.msra.mxu0 %v5232_v1  ;;  %5236 = vst [vmem:[#allocation124_spill] sm:$0xff] %v4066_v30  ;;  %v5237_v1 = vld [vmem:[#allocation97_spill] sm:$0xff]  ;;  %v4082_v12 = vsub.f32 %v3994_v24, %v5240_v54  ;;  %v4087_v62 = vsub.f32 %v3996_v41, %v5242_v8  ;;  %v5247_v54 = vand.u32 4294901760, %v4014_v14  ;;  %v4106_v8 = vpack.c.bf16 %v1635_v45, %v1623_v36 }
  0xaa   :  { %5228 = vst [vmem:[#allocation122_spill] sm:$0xff] %v4035_v56  ;;  %2697 = vmatprep.subr.bf16.mxu0 %v5237_v1  ;;  %v5243_v1 = vand.u32 4294901760, %v4004_v13  ;;  %5246 = vst [vmem:[#allocation128_spill] sm:$0xff] %v4098_v60  ;;  %v4117_v36 = vld [vmem:[#allocation2 + $0x2e0] sm:$0xff]  ;;  %v5249_v45 = vand.u32 4294901760, %v4020_v33  ;;  %v5252_v41 = vand.u32 4294901760, %v4068_v4  ;;  %2445 = vmatprep.subr.bf16.mxu1 %v5254_v6  ;;  %v1676_v21 = vsub.f32 %v4077_v49, %v5258_v48 }
  0xab   :  { %5241 = vst [vmem:[#allocation126_spill] sm:$0xff] %v4082_v12  ;;  %v4103_v24 = vsub.f32 %v4014_v14, %v5247_v54  ;;  %v5250_v54 = vand.u32 4294901760, %v4035_v56  ;;  %687 = vmatmul.mubr.f32.vlgmr.msra.gmra.mrb[0].mxu1 %v3495_v11 }
  0xac   :  { %v4093_v55 = vsub.f32 %v4004_v13, %v5243_v1  ;;  %v4123_v1 = vsub.f32 %v4020_v33, %v5249_v45  ;;  %v5251_v45 = vand.u32 4294901760, %v4047_v52  ;;  %v4144_v16 = vsub.f32 %v4068_v4, %v5252_v41  ;;  %887 = vmatprep.mubr.f32.mxu1 %v3489_v5 }
  0xad   :  { %5248 = vst [vmem:[#allocation129_spill] sm:$0xff] %v4103_v24  ;;  %2699 = vmatpush1.bf16.msra.mxu0 %v3464_v22  ;;  %v1658_v23 = vsub.f32 %v4035_v56, %v5250_v54  ;;  %v5253_v54 = vand.u32 4294901760, %v4070_v9  ;;  %v5256_v41 = vand.u32 4294901760, %v4061_v61  ;;  %v5257_v56 = vand.u32 4294901760, %v4066_v30 }
  0xae   :  { %5244 = vst [vmem:[#allocation127_spill] sm:$0xff] %v4093_v55  ;;  %2733 = vmatprep.subr.bf16.mxu0 %v3965_v18  ;;  %v1652_v38 = vsub.f32 %v4047_v52, %v5251_v45  ;;  %v5255_v45 = vand.u32 4294901760, %v4056_v51  ;;  %v5261_v22 = vand.u32 4294901760, %v4093_v55  ;;  %v5263_v49 = vand.u32 4294901760, %v4103_v24 }
  0xaf   :  { %v4149_v59 = vsub.f32 %v4070_v9, %v5253_v54  ;;  %v1670_v52 = vsub.f32 %v4061_v61, %v5256_v41  ;;  %v1682_v54 = vsub.f32 %v4066_v30, %v5257_v56  ;;  %v1641_v56 = vand.u32 4294901760, %v4042_v20 }
  0xb0   :  { %1433 = vmatmul.mubr.f32.vlgmr.msra.gmra.mrb[0].mxu0 %v3495_v11  ;;  %v1664_v18 = vsub.f32 %v4056_v51, %v5255_v45  ;;  %v5260_v45 = vand.u32 4294901760, %v4087_v62  ;;  %v5262_v30 = vand.u32 4294901760, %v4098_v60  ;;  %v5264_v11 = vpack.c.bf16 %v5148_v37, %v5147_v3 }
  0xb1   :  { %2735 = vmatpush1.bf16.msra.mxu0 %v3967_v35  ;;  %v5259_v35 = vand.u32 4294901760, %v4082_v12  ;;  %v1647_v20 = vand.u32 4294901760, %v4123_v1  ;;  %v1659_v37 = vand.u32 4294901760, %v1658_v23  ;;  %v1653_v3 = vand.u32 4294901760, %v1652_v38 }
  0xb2   :  { %2737 = vmatprep.subr.bf16.mxu0 %v3979_v58  ;;  %v1694_v41 = vsub.f32 %v4087_v62, %v5260_v45  ;;  %v1706_v58 = vsub.f32 %v4093_v55, %v5261_v22  ;;  %v1700_v48 = vsub.f32 %v4098_v60, %v5262_v30  ;;  %2447 = vmatpush1.bf16.msra.mxu1 %v5264_v11  ;;  %v5265_v55 = vand.u32 4294901760, %v4117_v36 }
  0xb3   :  { %v1688_v6 = vsub.f32 %v4082_v12, %v5259_v35  ;;  %v1712_v35 = vsub.f32 %v4103_v24, %v5263_v49  ;;  %v4908_v12 = vmov 0.0   ;;  %v5266_v49 = vpack.c.bf16 %v3008_v26, %v3006_v25 }
  0xb4   :  { %1771 = vmatprep.mubr.f32.mxu0 %v4908_v12  ;;  %v4197_v30 = vsub.f32 %v4117_v36, %v5265_v55  ;;  %v1665_v1 = vand.u32 4294901760, %v1664_v18  ;;  %v5267_v11 = vand.u32 4294901760, %v4128_v19  ;;  %v1671_v55 = vand.u32 4294901760, %v1670_v52 }
  0xb5   :  { %2449 = vmatprep.subr.bf16.mxu1 %v5266_v49  ;;  %2739 = vmatpush1.bf16.msra.mxu0 %v3981_v44  ;;  %v1683_v22 = vand.u32 4294901760, %v1682_v54  ;;  %v1677_v45 = vand.u32 4294901760, %v1676_v21  ;;  %v1689_v5 = vand.u32 4294901760, %v1688_v6  ;;  %v1695_v24 = vand.u32 4294901760, %v1694_v41  ;;  %v5276_v49 = vld [vmem:[#allocation31_spill] sm:$0xff] }
  0xb6   :  { %v4207_v12 = vsub.f32 %v4128_v19, %v5267_v11  ;;  %2741 = vmatprep.subr.bf16.mxu0 %v3999_v0  ;;  %v1707_v60 = vand.u32 4294901760, %v1706_v58  ;;  %v1701_v25 = vand.u32 4294901760, %v1700_v48  ;;  %v1713_v26 = vand.u32 4294901760, %v1712_v35  ;;  %v5275_v35 = vld [vmem:[#allocation29_spill] sm:$0xff] }
  0xb7   :  { %v5268_v44 = vpack.c.bf16 %v5157_v32, %v5156_v2  ;;  %v2460_v38 = vpack.c.bf16 %v3115_v29, %v3105_v63  ;;  %v5269_v23 = vand.u32 4294901760, %v4144_v16  ;;  %v5270_v0 = vand.u32 4294901760, %v4149_v59  ;;  %v5272_v2 = vld [vmem:[#allocation25_spill] sm:$0xff]  ;;  %v5273_v63 = vld [vmem:[#allocation27_spill] sm:$0xff] }
  0xb8   :  { %v4915_v54 = vand.u32 4294901760, %v4197_v30  ;;  %v5271_v21 = vpack.c.bf16 %v3038_v47, %v3036_v46  ;;  %v2462_v29 = vpack.c.bf16 %v5273_v63, %v5272_v2  ;;  %v5274_v32 = vand.u32 4294901760, %v4030_v34  ;;  %v5295_v2 = vld [vmem:[#allocation73_spill] sm:$0xff] }
  0xb9   :  { %2451 = vmatpush1.bf16.msra.mxu1 %v5268_v44  ;;  %v4218_v18 = vsub.f32 %v4144_v16, %v5269_v23  ;;  %v4223_v52 = vsub.f32 %v4149_v59, %v5270_v0  ;;  %2743 = vmatpush1.bf16.msra.mxu0 %v4025_v42  ;;  %v2464_v41 = vpack.c.bf16 %v3139_v28, %v3135_v40  ;;  %v1735_v58 = vand.u32 4294901760, %v4207_v12  ;;  %v5293_v0 = vld [vmem:[#allocation72_spill] sm:$0xff] }
  0xba   :  { %2453 = vmatprep.subr.bf16.mxu1 %v5271_v21  ;;  %v2746_v6 = vpack.c.bf16 %v1641_v56, %v5274_v32  ;;  %2745 = vmatprep.subr.bf16.mxu0 %v4106_v8  ;;  %v2748_v48 = vpack.c.bf16 %v1659_v37, %v1647_v20  ;;  %v2466_v46 = vpack.c.bf16 %v5276_v49, %v5275_v35  ;;  %v5278_v20 = vand.u32 4294901760, %v3729_v50  ;;  %v5279_v37 = vld [vmem:[#allocation48_spill] sm:$0xff]  ;;  %v5287_v50 = vld [vmem:[#allocation57_spill] sm:$0xff]  ;;  %v5299_v49 = vld [vmem:[#allocation95_spill] sm:$0xff] }
  0xbb   :  { %v2750_v47 = vpack.c.bf16 %v1665_v1, %v1653_v3  ;;  %v2468_v42 = vpack.c.bf16 %v3169_v43, %v3165_v7  ;;  %v2752_v11 = vpack.c.bf16 %v1683_v22, %v1671_v55  ;;  %v2754_v44 = vpack.c.bf16 %v1689_v5, %v1677_v45  ;;  %v5285_v22 = vld [vmem:[#allocation56_spill] sm:$0xff] }
  0xbc   :  { %v2756_v23 = vpack.c.bf16 %v1707_v60, %v1695_v24  ;;  %v2758_v34 = vpack.c.bf16 %v1713_v26, %v1701_v25  ;;  %v5277_v56 = vpack.c.bf16 %v5181_v53, %v5180_v31  ;;  %v1719_v40 = vand.u32 4294901760, %v4218_v18  ;;  %v5282_v31 = vld [vmem:[#allocation5_spill] sm:$0xff]  ;;  %v5289_v25 = vld [vmem:[#allocation64_spill] sm:$0xff] }
  0xbd   :  { %v1731_v28 = vand.u32 4294901760, %v4223_v52  ;;  %v1724_v8 = vsub.f32 %v4197_v30, %v4915_v54  ;;  %v5280_v7 = vand.u32 4294901760, %v5279_v37  ;;  %v5281_v5 = vpack.c.bf16 %v3080_v27, %v3070_v10  ;;  %2747 = vmatpush1.bf16.msra.mxu0 %v2746_v6  ;;  %v5283_v24 = vld [vmem:[#allocation49_spill] sm:$0xff]  ;;  %v5297_v32 = vld [vmem:[#allocation80_spill] sm:$0xff] }
  0xbe   :  { %2455 = vmatpush1.bf16.msra.mxu1 %v5277_v56  ;;  %v1736_v53 = vsub.f32 %v4207_v12, %v1735_v58  ;;  %v139_v60 = vsub.s32 2, %v5282_v31  ;;  %v5284_v45 = vand.u32 4294901760, %v5283_v24  ;;  %v5286_v3 = vand.u32 4294901760, %v5285_v22  ;;  %2749 = vmatprep.subr.bf16.mxu0 %v2748_v48  ;;  %v5291_v10 = vld [vmem:[#allocation65_spill] sm:$0xff]  ;;  %v5305_v24 = vld [vmem:[#allocation107_spill] sm:$0xff] }
  0xbf   :  { %v4254_v43 = vpack.c.bf16 %v5280_v7, %v5278_v20  ;;  %2457 = vmatprep.subr.bf16.mxu1 %v5281_v5  ;;  %v5288_v55 = vand.u32 4294901760, %v5287_v50  ;;  %v5290_v26 = vand.u32 4294901760, %v5289_v25  ;;  %v5292_v27 = vand.u32 4294901760, %v5291_v10  ;;  %v5301_v20 = vld [vmem:[#allocation7_spill] sm:$0xff]  ;;  %v5303_v5 = vld [vmem:[#allocation13_spill] sm:$0xff] }
  0xc0   :  { %v4265_v1 = vpack.c.bf16 %v5286_v3, %v5284_v45  ;;  %v5294_v52 = vand.u32 4294901760, %v5293_v0  ;;  %v5296_v63 = vand.u32 4294901760, %v5295_v2  ;;  %v5298_v6 = vand.u32 4294901760, %v5297_v32  ;;  %v5317_v32 = vld [vmem:[#allocation116_spill] sm:$0xff]  ;;  %v5376_v31 = vld [vmem:[#allocation111_spill] sm:$0xff] }
  0xc1   :  { %v4271_v18 = vpack.c.bf16 %v5290_v26, %v5288_v55  ;;  %v5300_v56 = vand.u32 4294901760, %v5299_v49  ;;  %v5302_v37 = vand.u32 4294901760, %v5301_v20  ;;  %v5304_v48 = vand.u32 4294901760, %v5303_v5  ;;  %v5319_v49 = vld [vmem:[#allocation117_spill] sm:$0xff]  ;;  %v5327_v5 = vld [vmem:[#allocation119_spill] sm:$0xff]  ;;  %2751 = vmatpush1.bf16.msra.mxu0 %v2750_v47 }
  0xc2   :  { %v4277_v21 = vpack.c.bf16 %v5294_v52, %v5292_v27  ;;  %v4283_v35 = vpack.c.bf16 %v5298_v6, %v5296_v63  ;;  %v5306_v45 = vand.u32 4294901760, %v5305_v24  ;;  %v5307_v3 = vand.u32 4294901760, %v3889_v15  ;;  %v5312_v27 = vld [vmem:[#allocation114_spill] sm:$0xff]  ;;  %v5314_v52 = vld [vmem:[#allocation115_spill] sm:$0xff]  ;;  %v5323_v20 = vld [vmem:[#allocation21_spill] sm:$0xff]  ;;  %2753 = vmatprep.subr.bf16.mxu0 %v2752_v11 }
  0xc3   :  { %v4289_v7 = vpack.c.bf16 %v5302_v37, %v5300_v56  ;;  %v5308_v50 = vand.u32 4294901760, %v3904_v17  ;;  %v5309_v25 = vand.u32 4294901760, %v3948_v39  ;;  %v5310_v26 = vand.u32 4294901760, %v3961_v57  ;;  %v5322_v17 = vld [vmem:[#allocation23_spill] sm:$0xff]  ;;  %v5325_v39 = vld [vmem:[#allocation118_spill] sm:$0xff] }
  0xc4   :  { %v4295_v22 = vpack.c.bf16 %v5306_v45, %v5304_v48  ;;  %v5313_v0 = vand.u32 4294901760, %v5312_v27  ;;  %v5315_v2 = vand.u32 4294901760, %v5314_v52  ;;  %v5318_v6 = vand.u32 4294901760, %v5317_v32  ;;  %v5330_v45 = vld [vmem:[#allocation120_spill] sm:$0xff] }
  0xc5   :  { %v4301_v55 = vpack.c.bf16 %v5308_v50, %v5307_v3  ;;  %v4307_v10 = vpack.c.bf16 %v5310_v26, %v5309_v25  ;;  %v5320_v15 = vand.u32 4294901760, %v5319_v49  ;;  %v5324_v37 = vpack.c.bf16 %v5322_v17, %v5323_v20  ;;  %v5334_v26 = vld [vmem:[#allocation121_spill] sm:$0xff]  ;;  %2755 = vmatpush1.bf16.msra.mxu0 %v2754_v44 }
  0xc6   :  { %v4313_v63 = vpack.c.bf16 %v5315_v2, %v5313_v0  ;;  %v5326_v57 = vand.u32 4294901760, %v5325_v39  ;;  %v5328_v48 = vand.u32 4294901760, %v5327_v5  ;;  %v5331_v3 = vand.u32 4294901760, %v5330_v45  ;;  %v5344_v20 = vld [vmem:[#allocation81_spill] sm:$0xff]  ;;  %2757 = vmatprep.subr.bf16.mxu0 %v2756_v23 }
  0xc7   :  { %5311 = vst [vmem:[#allocation25_spill] sm:$0xff] %v4307_v10  ;;  %v4319_v56 = vpack.c.bf16 %v5320_v15, %v5318_v6  ;;  %2459 = vmatpush1.bf16.msra.mxu1 %v5324_v37  ;;  %v5332_v50 = vand.u32 4294901760, %v4004_v13  ;;  %v5335_v27 = vand.u32 4294901760, %v5334_v26  ;;  %v5336_v0 = vand.u32 4294901760, %v4014_v14  ;;  %v5346_v14 = vld [vmem:[#allocation88_spill] sm:$0xff]  ;;  %v5361_v26 = vld [vmem:[#allocation106_spill] sm:$0xff] }
  0xc8   :  { %5316 = vst [vmem:[#allocation27_spill] sm:$0xff] %v4313_v63  ;;  %v4328_v24 = vpack.c.bf16 %v5328_v48, %v5326_v57  ;;  %v5338_v2 = vand.u32 4294901760, %v4068_v4  ;;  %v5339_v32 = vand.u32 4294901760, %v4070_v9  ;;  %2461 = vmatprep.subr.bf16.mxu1 %v2460_v38  ;;  %v1725_v49 = vand.u32 4294901760, %v1724_v8  ;;  %v5349_v4 = vld [vmem:[#allocation8_spill] sm:$0xff]  ;;  %v5354_v38 = vld [vmem:[#allocation11_spill] sm:$0xff] }
  0xc9   :  { %5321 = vst [vmem:[#allocation29_spill] sm:$0xff] %v4319_v56  ;;  %v4334_v25 = vpack.c.bf16 %v5332_v50, %v5331_v3  ;;  %v4340_v52 = vpack.c.bf16 %v5336_v0, %v5335_v27  ;;  %v5341_v15 = vand.u32 4294901760, %v4117_v36  ;;  %v5342_v13 = vand.u32 4294901760, %v4128_v19  ;;  %v5351_v9 = vld [vmem:[#allocation12_spill] sm:$0xff]  ;;  %v5356_v36 = vld [vmem:[#allocation15_spill] sm:$0xff]  ;;  %v5359_v3 = vld [vmem:[#allocation105_spill] sm:$0xff]  ;;  %2759 = vmatpush1.bf16.msra.mxu0 %v2758_v34 }
  0xca   :  { %5329 = vst [vmem:[#allocation31_spill] sm:$0xff] %v4328_v24  ;;  %v4346_v6 = vpack.c.bf16 %v5339_v32, %v5338_v2  ;;  %v5345_v37 = vand.u32 4294901760, %v5344_v20  ;;  %v5347_v39 = vand.u32 4294901760, %v5346_v14  ;;  %v5350_v5 = vand.u32 4294901760, %v5349_v4  ;;  %v5364_v2 = vld [vmem:[#allocation108_spill] sm:$0xff]  ;;  %v5416_v44 = vld [vmem:[#allocation37_spill] sm:$0xff] }
  0xcb   :  { %5333 = vst [vmem:[#allocation48_spill] sm:$0xff] %v4334_v25  ;;  %5337 = vst [vmem:[#allocation49_spill] sm:$0xff] %v4340_v52  ;;  %v4352_v17 = vpack.c.bf16 %v5342_v13, %v5341_v15  ;;  %v5352_v48 = vand.u32 4294901760, %v5351_v9  ;;  %v5355_v47 = vand.u32 4294901760, %v5354_v38  ;;  %v5357_v8 = vand.u32 4294901760, %v5356_v36  ;;  %v5366_v15 = vld [vmem:[#allocation109_spill] sm:$0xff]  ;;  %2463 = vmatpush1.bf16.msra.mxu1 %v2462_v29 }
  0xcc   :  { %5340 = vst [vmem:[#allocation56_spill] sm:$0xff] %v4346_v6  ;;  %v4358_v57 = vpack.c.bf16 %v5347_v39, %v5345_v37  ;;  %v5360_v50 = vand.u32 4294901760, %v5359_v3  ;;  %v5362_v27 = vand.u32 4294901760, %v5361_v26  ;;  %v5365_v32 = vand.u32 4294901760, %v5364_v2  ;;  %v5369_v39 = vld [vmem:[#allocation18_spill] sm:$0xff]  ;;  %2465 = vmatprep.subr.bf16.mxu1 %v2464_v41  ;;  %v5419_v23 = vld [vmem:[#allocation41_spill] sm:$0xff] }
  0xcd   :  { %5343 = vst [vmem:[#allocation57_spill] sm:$0xff] %v4352_v17  ;;  %v4364_v45 = vpack.c.bf16 %v5352_v48, %v5350_v5  ;;  %v4370_v19 = vpack.c.bf16 %v5357_v8, %v5355_v47  ;;  %v5367_v13 = vand.u32 4294901760, %v5366_v15  ;;  %v5370_v11 = vand.u32 4294901760, %v5369_v39  ;;  %v5371_v5 = vld [vmem:[#allocation19_spill] sm:$0xff]  ;;  %v5374_v47 = vld [vmem:[#allocation110_spill] sm:$0xff] }
  0xce   :  { %5348 = vst [vmem:[#allocation64_spill] sm:$0xff] %v4358_v57  ;;  %v4376_v0 = vpack.c.bf16 %v5362_v27, %v5360_v50  ;;  %v5372_v48 = vand.u32 4294901760, %v5371_v5  ;;  %v5375_v8 = vand.u32 4294901760, %v5374_v47  ;;  %v5379_v50 = vld [vmem:[#allocation112_spill] sm:$0xff]  ;;  %v2766_v34 = vpack.c.bf16 %v5351_v9, %v5349_v4 }
  0xcf   :  { %5353 = vst [vmem:[#allocation65_spill] sm:$0xff] %v4364_v45  ;;  %5358 = vst [vmem:[#allocation72_spill] sm:$0xff] %v4370_v19  ;;  %v4382_v37 = vpack.c.bf16 %v5367_v13, %v5365_v32  ;;  %v5377_v19 = vand.u32 4294901760, %v5376_v31  ;;  %v5380_v27 = vand.u32 4294901760, %v5379_v50  ;;  %v5384_v32 = vand.u32 4294901760, %v4020_v33  ;;  %v5385_v13 = vld [vmem:[#allocation122_spill] sm:$0xff]  ;;  %2467 = vmatpush1.bf16.msra.mxu1 %v2466_v46 }
  0xd0   :  { %5363 = vst [vmem:[#allocation73_spill] sm:$0xff] %v4376_v0  ;;  %v4388_v54 = vpack.c.bf16 %v5372_v48, %v5370_v11  ;;  %v5381_v0 = vld [vmem:[#allocation113_spill] sm:$0xff]  ;;  %v5388_v11 = vld [vmem:[#allocation123_spill] sm:$0xff]  ;;  %2469 = vmatprep.subr.bf16.mxu1 %v2468_v42  ;;  %v5425_v4 = vld [vmem:[#allocation52_spill] sm:$0xff] }
  0xd1   :  { %5368 = vst [vmem:[#allocation80_spill] sm:$0xff] %v4382_v37  ;;  %v4394_v45 = vpack.c.bf16 %v5377_v19, %v5375_v8  ;;  %v5382_v57 = vand.u32 4294901760, %v5381_v0  ;;  %v5386_v37 = vand.u32 4294901760, %v5385_v13  ;;  %v5389_v48 = vand.u32 4294901760, %v5388_v11  ;;  %v5393_v8 = vld [vmem:[#allocation124_spill] sm:$0xff]  ;;  %v5418_v46 = vld [vmem:[#allocation39_spill] sm:$0xff] }
  0xd2   :  { %5373 = vst [vmem:[#allocation95_spill] sm:$0xff] %v4388_v54  ;;  %v5390_v54 = vand.u32 4294901760, %v4056_v51  ;;  %v5392_v19 = vand.u32 4294901760, %v4061_v61  ;;  %v5420_v42 = vld [vmem:[#allocation43_spill] sm:$0xff] }
  0xd3   :  { %5378 = vst [vmem:[#allocation7_spill] sm:$0xff] %v4394_v45  ;;  %v4400_v17 = vpack.c.bf16 %v5382_v57, %v5380_v27  ;;  %v4406_v6 = vpack.c.bf16 %v5386_v37, %v5384_v32  ;;  %v5394_v45 = vand.u32 4294901760, %v5393_v8  ;;  %v5396_v57 = vld [vmem:[#allocation125_spill] sm:$0xff]  ;;  %v5401_v37 = vand.u32 4294901760, %v4087_v62  ;;  %v5402_v32 = vld [vmem:[#allocation127_spill] sm:$0xff] }
  0xd4   :  { %v4412_v52 = vpack.c.bf16 %v5390_v54, %v5389_v48  ;;  %v5397_v27 = vand.u32 4294901760, %v5396_v57  ;;  %v5405_v54 = vld [vmem:[#allocation128_spill] sm:$0xff]  ;;  %v5407_v48 = vld [vmem:[#allocation129_spill] sm:$0xff] }
  0xd5   :  { %5383 = vst [vmem:[#allocation13_spill] sm:$0xff] %v4400_v17  ;;  %5387 = vst [vmem:[#allocation107_spill] sm:$0xff] %v4406_v6  ;;  %v4418_v25 = vpack.c.bf16 %v5394_v45, %v5392_v19  ;;  %v5398_v17 = vld [vmem:[#allocation126_spill] sm:$0xff]  ;;  %v5403_v6 = vand.u32 4294901760, %v5402_v32  ;;  %v5406_v29 = vand.u32 4294901760, %v5405_v54  ;;  %v1737_v45 = vand.u32 4294901760, %v1736_v53 }
  0xd6   :  { %5391 = vst [vmem:[#allocation114_spill] sm:$0xff] %v4412_v52  ;;  %v5399_v24 = vand.u32 4294901760, %v5398_v17  ;;  %v5408_v52 = vand.u32 4294901760, %v5407_v48  ;;  %v5410_v19 = vld [vmem:[#allocation96_spill] sm:$0xff]  ;;  %v5417_v53 = vld [vmem:[#allocation38_spill] sm:$0xff] }
  0xd7   :  { %5395 = vst [vmem:[#allocation115_spill] sm:$0xff] %v4418_v25  ;;  %v4430_v63 = vpack.c.bf16 %v5403_v6, %v5401_v37  ;;  %v140_v25 = vrot.slane %v5410_v19, %v139_v60  ;;  %v5413_v6 = vand.u32 4294901760, %v4197_v30  ;;  %v2472_v60 = vpack.c.bf16 %v5417_v53, %v5416_v44  ;;  %v5429_v53 = vld [vmem:[#allocation59_spill] sm:$0xff] }
  0xd8   :  { %v4424_v56 = vpack.c.bf16 %v5399_v24, %v5397_v27  ;;  %v4436_v10 = vpack.c.bf16 %v5408_v52, %v5406_v29  ;;  %v5411_v24 = vand.u32 4294901760, %v4144_v16  ;;  %v5412_v27 = vand.u32 4294901760, %v4149_v59  ;;  %v5414_v52 = vld [vmem:[#allocation33_spill] sm:$0xff]  ;;  %v5415_v29 = vld [vmem:[#allocation35_spill] sm:$0xff] }
  0xd9   :  { %5404 = vst [vmem:[#allocation117_spill] sm:$0xff] %v4430_v63  ;;  %v4447_v37 = vpack.c.bf16 %v1735_v58, %v5413_v6  ;;  %v2760_v63 = vpack.c.bf16 %v1731_v28, %v1719_v40  ;;  %v2470_v41 = vpack.c.bf16 %v5415_v29, %v5414_v52  ;;  %v2762_v19 = vpack.c.bf16 %v1737_v45, %v1725_v49  ;;  %v5421_v28 = vld [vmem:[#allocation44_spill] sm:$0xff]  ;;  %v5424_v6 = vld [vmem:[#allocation51_spill] sm:$0xff]  ;;  %v5427_v29 = vld [vmem:[#allocation53_spill] sm:$0xff] }
  0xda   :  { %5400 = vst [vmem:[#allocation116_spill] sm:$0xff] %v4424_v56  ;;  %5409 = vst [vmem:[#allocation23_spill] sm:$0xff] %v4436_v10  ;;  %v4443_v56 = vpack.c.bf16 %v5412_v27, %v5411_v24  ;;  %v4453_v10 = vand.u32 4294901760, %v140_v25  ;;  %v2764_v24 = vpack.c.bf16 %v5346_v14, %v5344_v20  ;;  %v2474_v40 = vpack.c.bf16 %v5419_v23, %v5418_v46  ;;  %v5422_v20 = vld [vmem:[#allocation45_spill] sm:$0xff]  ;;  %v5423_v14 = vld [vmem:[#allocation47_spill] sm:$0xff] }
  0xdb   :  { %2761 = vmatprep.subr.bf16.mxu0 %v2760_v63  ;;  %2471 = vmatpush1.bf16.msra.mxu1 %v2470_v41  ;;  %v2476_v27 = vpack.c.bf16 %v5421_v28, %v5420_v42  ;;  %v2768_v49 = vpack.c.bf16 %v5356_v36, %v5354_v38  ;;  %v2478_v45 = vpack.c.bf16 %v5423_v14, %v5422_v20  ;;  %v5426_v36 = vmov 0.0   ;;  %v5428_v41 = vld [vmem:[#allocation55_spill] sm:$0xff]  ;;  %v5434_v23 = vld [vmem:[#allocation68_spill] sm:$0xff] }
  0xdc   :  { %v4458_v58 = vsub.f32 %v140_v25, %v4453_v10  ;;  %2473 = vmatprep.subr.bf16.mxu1 %v2472_v60  ;;  %2763 = vmatpush1.bf16.msra.mxu0 %v2762_v19  ;;  %v2480_v9 = vpack.c.bf16 %v5425_v4, %v5424_v6  ;;  %v2770_v52 = vpack.c.bf16 %v5361_v26, %v5359_v3  ;;  %v5430_v60 = vld [vmem:[#allocation60_spill] sm:$0xff]  ;;  %v5431_v26 = vld [vmem:[#allocation61_spill] sm:$0xff]  ;;  %v5433_v46 = vld [vmem:[#allocation67_spill] sm:$0xff] }
  0xdd   :  { %2765 = vmatprep.subr.bf16.mxu0 %v2764_v24  ;;  %v2772_v38 = vpack.c.bf16 %v5366_v15, %v5364_v2  ;;  %v2482_v44 = vpack.c.bf16 %v5428_v41, %v5427_v29  ;;  %v2484_v19 = vpack.c.bf16 %v5430_v60, %v5429_v53  ;;  %v2774_v24 = vpack.c.bf16 %v5371_v5, %v5369_v39  ;;  %v5432_v2 = vld [vmem:[#allocation63_spill] sm:$0xff]  ;;  %v5435_v5 = vld [vmem:[#allocation69_spill] sm:$0xff]  ;;  %v5442_v14 = vld [vmem:[#allocation84_spill] sm:$0xff] }
  0xde   :  { %v1538_v63 = vand.u32 4294901760, %v4458_v58  ;;  %v2776_v3 = vpack.c.bf16 %v5376_v31, %v5374_v47  ;;  %v2486_v15 = vpack.c.bf16 %v5432_v2, %v5431_v26  ;;  %v2778_v42 = vpack.c.bf16 %v5381_v0, %v5379_v50  ;;  %v5436_v28 = vld [vmem:[#allocation71_spill] sm:$0xff]  ;;  %v5439_v50 = vld [vmem:[#allocation77_spill] sm:$0xff]  ;;  %v5448_v29 = vld [vmem:[#allocation94_spill] sm:$0xff] }
  0xdf   :  { %2475 = vmatpush1.bf16.msra.mxu1 %v2474_v40  ;;  %1773 = vmatmul.mubr.f32.vlgmr.msra.gmra.mrb[2].mxu0 %v4453_v10  ;;  %v2488_v40 = vpack.c.bf16 %v5434_v23, %v5433_v46  ;;  %v2780_v39 = vpack.c.bf16 %v5385_v13, %v4020_v33  ;;  %v2490_v31 = vpack.c.bf16 %v5436_v28, %v5435_v5  ;;  %v5437_v47 = vld [vmem:[#allocation75_spill] sm:$0xff]  ;;  %v5451_v60 = vld [vmem:[#allocation100_spill] sm:$0xff]  ;;  %v5461_v2 = vld [vmem:[#allocation17_spill] sm:$0xff] }
  0xe0   :  { %v4472_v25 = vsub.f32 %v4458_v58, %v1538_v63  ;;  %2477 = vmatprep.subr.bf16.mxu1 %v2476_v27  ;;  %2767 = vmatpush1.bf16.msra.mxu0 %v2766_v34  ;;  %v5438_v27 = vld [vmem:[#allocation76_spill] sm:$0xff]  ;;  %v2784_v0 = vpack.c.bf16 %v5393_v8, %v4061_v61  ;;  %v5440_v20 = vld [vmem:[#allocation79_spill] sm:$0xff]  ;;  %v2786_v6 = vpack.c.bf16 %v5398_v17, %v5396_v57  ;;  %v5445_v8 = vld [vmem:[#allocation90_spill] sm:$0xff] }
  0xe1   :  { %2769 = vmatprep.subr.bf16.mxu0 %v2768_v49  ;;  %1907 = vmatprep.mubr.f32.mxu0 %v5426_v36  ;;  %v2492_v34 = vpack.c.bf16 %v5438_v27, %v5437_v47  ;;  %v2782_v49 = vpack.c.bf16 %v4056_v51, %v5388_v11  ;;  %v2494_v33 = vpack.c.bf16 %v5440_v20, %v5439_v50  ;;  %v5441_v13 = vld [vmem:[#allocation83_spill] sm:$0xff]  ;;  %v5443_v11 = vld [vmem:[#allocation85_spill] sm:$0xff]  ;;  %v5447_v57 = vld [vmem:[#allocation92_spill] sm:$0xff] }
  0xe2   :  { %v2788_v51 = vpack.c.bf16 %v5402_v32, %v4087_v62  ;;  %v5444_v4 = vld [vmem:[#allocation87_spill] sm:$0xff]  ;;  %v2792_v17 = vpack.c.bf16 %v4149_v59, %v4144_v16  ;;  %v2502_v62 = vpack.c.bf16 %v5448_v29, %v5447_v57  ;;  %v5449_v32 = vld [vmem:[#allocation98_spill] sm:$0xff]  ;;  %v2794_v53 = vpack.c.bf16 %v4207_v12, %v4197_v30  ;;  %v5454_v12 = vld [vmem:[#allocation104_spill] sm:$0xff] }
  0xe3   :  { %2479 = vmatpush1.bf16.msra.mxu1 %v2478_v45  ;;  %v2496_v45 = vpack.c.bf16 %v5442_v14, %v5441_v13  ;;  %v2498_v61 = vpack.c.bf16 %v5444_v4, %v5443_v11  ;;  %v5450_v41 = vld [vmem:[#allocation99_spill] sm:$0xff]  ;;  %v5453_v59 = vld [vmem:[#allocation6_spill] sm:$0xff]  ;;  %v5455_v16 = vld [vmem:[#allocation9_spill] sm:$0xff] }
  0xe4   :  { %2481 = vmatprep.subr.bf16.mxu1 %v2480_v9  ;;  %2771 = vmatpush1.bf16.msra.mxu0 %v2770_v52  ;;  %v5446_v9 = vld [vmem:[#allocation91_spill] sm:$0xff]  ;;  %v5460_v26 = vld [vmem:[#allocation16_spill] sm:$0xff]  ;;  %v5463_v46 = vld [vmem:[#allocation25_spill] sm:$0xff] }
  0xe5   :  { %2773 = vmatprep.subr.bf16.mxu0 %v2772_v38  ;;  %v2500_v52 = vpack.c.bf16 %v5446_v9, %v5445_v8  ;;  %v2790_v38 = vpack.c.bf16 %v5407_v48, %v5405_v54  ;;  %v5452_v54 = vld [vmem:[#allocation102_spill] sm:$0xff]  ;;  %v5456_v30 = vld [vmem:[#allocation103_spill] sm:$0xff]  ;;  %v5469_v28 = vld [vmem:[#allocation28_spill] sm:$0xff] }
  0xe6   :  { %v2506_v48 = vpack.c.bf16 %v5452_v54, %v5451_v60  ;;  %v5464_v23 = vld [vmem:[#allocation22_spill] sm:$0xff]  ;;  %v5471_v47 = vld [vmem:[#allocation48_spill] sm:$0xff]  ;;  %v5494_v57 = vld [vmem:[#allocation13_spill] sm:$0xff] }
  0xe7   :  { %2483 = vmatpush1.bf16.msra.mxu1 %v2482_v44  ;;  %v2504_v44 = vpack.c.bf16 %v5450_v41, %v5449_v32  ;;  %v5468_v5 = vld [vmem:[#allocation26_spill] sm:$0xff]  ;;  %v5477_v20 = vld [vmem:[#allocation36_spill] sm:$0xff]  ;;  %v5495_v29 = vld [vmem:[#allocation107_spill] sm:$0xff] }
  0xe8   :  { %2485 = vmatprep.subr.bf16.mxu1 %v2484_v19  ;;  %2775 = vmatpush1.bf16.msra.mxu0 %v2774_v24  ;;  %v5457_v19 = vand.u32 4294901760, %v5456_v30  ;;  %v5458_v24 = vld [vmem:[#allocation10_spill] sm:$0xff]  ;;  %v5479_v13 = vld [vmem:[#allocation64_spill] sm:$0xff]  ;;  %v5506_v30 = vld [vmem:[#allocation23_spill] sm:$0xff] }
  0xe9   :  { %2777 = vmatprep.subr.bf16.mxu0 %v2776_v3  ;;  %v5459_v3 = vld [vmem:[#allocation14_spill] sm:$0xff]  ;;  %v5480_v14 = vld [vmem:[#allocation40_spill] sm:$0xff] }
  0xea   :  { %v5472_v27 = vld [vmem:[#allocation30_spill] sm:$0xff]  ;;  %v5487_v8 = vld [vmem:[#allocation80_spill] sm:$0xff] }
  0xeb   :  { %2487 = vmatpush1.bf16.msra.mxu1 %v2486_v15  ;;  %v5462_v15 = vld [vmem:[#allocation20_spill] sm:$0xff]  ;;  %v5476_v50 = vld [vmem:[#allocation34_spill] sm:$0xff] }
  0xec   :  { %2489 = vmatprep.subr.bf16.mxu1 %v2488_v40  ;;  %2779 = vmatpush1.bf16.msra.mxu0 %v2778_v42  ;;  %v5465_v40 = vld [vmem:[#allocation24_spill] sm:$0xff]  ;;  %v5466_v42 = vld [vmem:[#allocation27_spill] sm:$0xff]  ;;  %v5484_v11 = vld [vmem:[#allocation46_spill] sm:$0xff] }
  0xed   :  { %2781 = vmatprep.subr.bf16.mxu0 %v2780_v39  ;;  %v5467_v39 = vld [vmem:[#allocation29_spill] sm:$0xff]  ;;  %v5485_v4 = vld [vmem:[#allocation50_spill] sm:$0xff]  ;;  %v5502_v54 = vld [vmem:[#allocation116_spill] sm:$0xff] }
  0xee   :  { %v5488_v9 = vld [vmem:[#allocation54_spill] sm:$0xff] }
  0xef   :  { %2491 = vmatpush1.bf16.msra.mxu1 %v2490_v31  ;;  %v5470_v31 = vld [vmem:[#allocation31_spill] sm:$0xff]  ;;  %v5497_v32 = vld [vmem:[#allocation74_spill] sm:$0xff] }
  0xf0   :  { %2493 = vmatprep.subr.bf16.mxu1 %v2492_v34  ;;  %2783 = vmatpush1.bf16.msra.mxu0 %v2782_v49  ;;  %v5473_v34 = vld [vmem:[#allocation32_spill] sm:$0xff]  ;;  %v5474_v49 = vld [vmem:[#allocation49_spill] sm:$0xff]  ;;  %v5498_v41 = vld [vmem:[#allocation114_spill] sm:$0xff] }
  0xf1   :  { %2785 = vmatprep.subr.bf16.mxu0 %v2784_v0  ;;  %v5475_v0 = vld [vmem:[#allocation56_spill] sm:$0xff]  ;;  %v5501_v60 = vld [vmem:[#allocation82_spill] sm:$0xff] }
  0xf3   :  { %2495 = vmatpush1.bf16.msra.mxu1 %v2494_v33  ;;  %v5478_v33 = vld [vmem:[#allocation57_spill] sm:$0xff] }
  0xf4   :  { %2497 = vmatprep.subr.bf16.mxu1 %v2496_v45  ;;  %2787 = vmatpush1.bf16.msra.mxu0 %v2786_v6  ;;  %v5481_v45 = vld [vmem:[#allocation42_spill] sm:$0xff]  ;;  %v5482_v6 = vld [vmem:[#allocation65_spill] sm:$0xff] }
  0xf5   :  { %2789 = vmatprep.subr.bf16.mxu0 %v2788_v51  ;;  %v5483_v51 = vld [vmem:[#allocation72_spill] sm:$0xff] }
  0xf7   :  { %2499 = vmatpush1.bf16.msra.mxu1 %v2498_v61  ;;  %v5486_v61 = vld [vmem:[#allocation73_spill] sm:$0xff] }
  0xf8   :  { %2501 = vmatprep.subr.bf16.mxu1 %v2500_v52  ;;  %2791 = vmatpush1.bf16.msra.mxu0 %v2790_v38  ;;  %v5491_v52 = vld [vmem:[#allocation7_spill] sm:$0xff]  ;;  %v5492_v38 = vld [vmem:[#allocation62_spill] sm:$0xff] }
  0xf9   :  { %2793 = vmatprep.subr.bf16.mxu0 %v2792_v17  ;;  %v5493_v17 = vld [vmem:[#allocation66_spill] sm:$0xff] }
  0xfb   :  { %2503 = vmatpush1.bf16.msra.mxu1 %v2502_v62  ;;  %v5496_v62 = vld [vmem:[#allocation70_spill] sm:$0xff] }
  0xfc   :  { %2505 = vmatprep.subr.bf16.mxu1 %v2504_v44  ;;  %2795 = vmatpush1.bf16.msra.mxu0 %v2794_v53  ;;  %v5499_v44 = vld [vmem:[#allocation115_spill] sm:$0xff]  ;;  %v5500_v53 = vld [vmem:[#allocation78_spill] sm:$0xff] }
  0xfd   :  { %2797 = vmatprep.subr.bf16.mxu0 %v4254_v43 }
  0xff   :  { %2507 = vmatpush1.bf16.msra.mxu1 %v2506_v48  ;;  %1910 = vmatmul.mubr.f32.vlgmr.msra.gmra.mrb[2].mxu0 %v4458_v58  ;;  %v5489_v58 = vld [vmem:[#allocation58_spill] sm:$0xff]  ;;  %v5503_v48 = vld [vmem:[#allocation117_spill] sm:$0xff] }
 0x100   :  { %2509 = vmatprep.subr.bf16.mxu1 %v5453_v59  ;;  %2799 = vmatpush1.bf16.msra.mxu0 %v4265_v1  ;;  %v5504_v59 = vld [vmem:[#allocation86_spill] sm:$0xff] }
 0x101   :  { %2801 = vmatprep.subr.bf16.mxu0 %v4271_v18  ;;  %2012 = vmatprep.mubr.f32.mxu0 %v5426_v36 }
 0x102   :  { %890 = vmatmul.mubr.f32.vlgmr.msra.gmra.mrb[0].mxu1 %v5454_v12 }
 0x103   :  { %2511 = vmatpush1.bf16.msra.mxu1 %v5455_v16  ;;  %1027 = vmatprep.mubr.f32.mxu1 %v5457_v19  ;;  %v5505_v16 = vld [vmem:[#allocation89_spill] sm:$0xff] }
 0x104   :  { %2513 = vmatprep.subr.bf16.mxu1 %v5458_v24  ;;  %2803 = vmatpush1.bf16.msra.mxu0 %v4277_v21  ;;  %v5507_v19 = vld [vmem:[#allocation93_spill] sm:$0xff] }
 0x105   :  { %2805 = vmatprep.subr.bf16.mxu0 %v4283_v35  ;;  %v5508_v24 = vld [vmem:[#allocation97_spill] sm:$0xff] }
 0x107   :  { %2515 = vmatpush1.bf16.msra.mxu1 %v5459_v3  ;;  %v5509_v3 = vld [vmem:[#allocation101_spill] sm:$0xff] }
 0x108   :  { %2517 = vmatprep.subr.bf16.mxu1 %v5460_v26  ;;  %2807 = vmatpush1.bf16.msra.mxu0 %v4289_v7 }
 0x109   :  { %2809 = vmatprep.subr.bf16.mxu0 %v4295_v22 }
 0x10b   :  { %2519 = vmatpush1.bf16.msra.mxu1 %v5461_v2 }
 0x10c   :  { %2521 = vmatprep.subr.bf16.mxu1 %v5462_v15  ;;  %2811 = vmatpush1.bf16.msra.mxu0 %v4301_v55 }
 0x10d   :  { %2813 = vmatprep.subr.bf16.mxu0 %v5463_v46 }
 0x10f   :  { %2523 = vmatpush1.bf16.msra.mxu1 %v5464_v23 }
 0x110   :  { %2525 = vmatprep.subr.bf16.mxu1 %v5465_v40  ;;  %2815 = vmatpush1.bf16.msra.mxu0 %v5466_v42 }
 0x111   :  { %2817 = vmatprep.subr.bf16.mxu0 %v5467_v39 }
 0x113   :  { %2527 = vmatpush1.bf16.msra.mxu1 %v5468_v5 }
 0x114   :  { %2529 = vmatprep.subr.bf16.mxu1 %v5469_v28  ;;  %2819 = vmatpush1.bf16.msra.mxu0 %v5470_v31 }
 0x115   :  { %2821 = vmatprep.subr.bf16.mxu0 %v5471_v47 }
 0x117   :  { %2531 = vmatpush1.bf16.msra.mxu1 %v5472_v27 }
 0x118   :  { %2533 = vmatprep.subr.bf16.mxu1 %v5473_v34  ;;  %2823 = vmatpush1.bf16.msra.mxu0 %v5474_v49 }
 0x119   :  { %2825 = vmatprep.subr.bf16.mxu0 %v5475_v0 }
 0x11b   :  { %2535 = vmatpush1.bf16.msra.mxu1 %v5476_v50 }
 0x11c   :  { %2537 = vmatprep.subr.bf16.mxu1 %v5477_v20  ;;  %2827 = vmatpush1.bf16.msra.mxu0 %v5478_v33 }
 0x11d   :  { %2829 = vmatprep.subr.bf16.mxu0 %v5479_v13 }
 0x11f   :  { %2539 = vmatpush1.bf16.msra.mxu1 %v5480_v14  ;;  %2016 = vmatmul.mubr.f32.vlgmr.msra.gmra.mrb[2].mxu0 %v1538_v63  ;;  %v5490_v63 = vld [vmem:[#allocation95_spill] sm:$0xff] }
 0x120   :  { %2541 = vmatprep.subr.bf16.mxu1 %v5481_v45  ;;  %2831 = vmatpush1.bf16.msra.mxu0 %v5482_v6 }
 0x121   :  { %2833 = vmatprep.subr.bf16.mxu0 %v5483_v51  ;;  %2182 = vmatprep.mubr.f32.mxu0 %v5426_v36 }
 0x123   :  { %2543 = vmatpush1.bf16.msra.mxu1 %v5484_v11 }
 0x124   :  { %2545 = vmatprep.subr.bf16.mxu1 %v5485_v4  ;;  %2835 = vmatpush1.bf16.msra.mxu0 %v5486_v61 }
 0x125   :  { %2837 = vmatprep.subr.bf16.mxu0 %v5487_v8 }
 0x127   :  { %2547 = vmatpush1.bf16.msra.mxu1 %v5488_v9 }
 0x128   :  { %2549 = vmatprep.subr.bf16.mxu1 %v5489_v58  ;;  %2839 = vmatpush1.bf16.msra.mxu0 %v5490_v63 }
 0x129   :  { %2841 = vmatprep.subr.bf16.mxu0 %v5491_v52 }
 0x12b   :  { %2551 = vmatpush1.bf16.msra.mxu1 %v5492_v38 }
 0x12c   :  { %2553 = vmatprep.subr.bf16.mxu1 %v5493_v17  ;;  %2843 = vmatpush1.bf16.msra.mxu0 %v5494_v57 }
 0x12d   :  { %2845 = vmatprep.subr.bf16.mxu0 %v5495_v29 }
 0x12f   :  { %2555 = vmatpush1.bf16.msra.mxu1 %v5496_v62 }
 0x130   :  { %2557 = vmatprep.subr.bf16.mxu1 %v5497_v32  ;;  %2847 = vmatpush1.bf16.msra.mxu0 %v5498_v41 }
 0x131   :  { %2849 = vmatprep.subr.bf16.mxu0 %v5499_v44 }
 0x133   :  { %2559 = vmatpush1.bf16.msra.mxu1 %v5500_v53 }
 0x134   :  { %2561 = vmatprep.subr.bf16.mxu1 %v5501_v60  ;;  %2851 = vmatpush1.bf16.msra.mxu0 %v5502_v54 }
 0x135   :  { %2853 = vmatprep.subr.bf16.mxu0 %v5503_v48 }
 0x137   :  { %2563 = vmatpush1.bf16.msra.mxu1 %v5504_v59 }
 0x138   :  { %2565 = vmatprep.subr.bf16.mxu1 %v5505_v16  ;;  %2855 = vmatpush1.bf16.msra.mxu0 %v5506_v30 }
 0x139   :  { %2857 = vmatprep.subr.bf16.mxu0 %v4443_v56  ;;  %v5510_v56 = vand.u32 4294901760, %v5454_v12 }
 0x13b   :  { %2567 = vmatpush1.bf16.msra.mxu1 %v5507_v19 }
 0x13c   :  { %2569 = vmatprep.subr.bf16.mxu1 %v5508_v24  ;;  %2859 = vmatpush1.bf16.msra.mxu0 %v4447_v37 }
 0x13d   :  { %2861 = vmatprep.subr.bf16.mxu0 %v4254_v43 }
 0x13f   :  { %2571 = vmatpush1.bf16.msra.mxu1 %v5509_v3  ;;  %2184 = vmatmul.mubr.f32.vlgmr.msra.gmra.mrb[2].mxu0 %v4453_v10 }
 0x140   :  { %2701 = vmatprep.subr.bf16.mxu1 %v4254_v43  ;;  %2863 = vmatpush1.bf16.msra.mxu0 %v4265_v1  ;;  %v1540_v43 = vand.u32 4294901760, %v4472_v25 }
 0x141   :  { %2865 = vmatprep.subr.bf16.mxu0 %v4271_v18  ;;  %2286 = vmatprep.mubr.f32.mxu0 %v5426_v36 }
 0x142   :  { %1031 = vmatmul.mubr.f32.vlgmr.msra.gmra.mrb[0].mxu1 %v5510_v56 }
 0x143   :  { %2703 = vmatpush1.bf16.msra.mxu1 %v4265_v1  ;;  %1535 = vmatprep.mubr.f32.mxu1 %v5426_v36 }
 0x144   :  { %2705 = vmatprep.subr.bf16.mxu1 %v4271_v18  ;;  %2867 = vmatpush1.bf16.msra.mxu0 %v4277_v21 }
 0x145   :  { %2869 = vmatprep.subr.bf16.mxu0 %v4283_v35 }
 0x147   :  { %2707 = vmatpush1.bf16.msra.mxu1 %v4277_v21  ;;  %v127_v21 = vld [vmem:[%s4658_s2] sm:$0x3] }
 0x148   :  { %2709 = vmatprep.subr.bf16.mxu1 %v4283_v35  ;;  %2871 = vmatpush1.bf16.msra.mxu0 %v4289_v7  ;;  %v5511_v35 = vld [vmem:[#allocation5_spill] sm:$0xff] }
 0x149   :  { %2873 = vmatprep.subr.bf16.mxu0 %v4295_v22 }
 0x14b   :  { %2711 = vmatpush1.bf16.msra.mxu1 %v4289_v7  ;;  %v5512_v7 = vsub.s32 0, %v5511_v35 }
 0x14c   :  { %2713 = vmatprep.subr.bf16.mxu1 %v4295_v22  ;;  %2875 = vmatpush1.bf16.msra.mxu0 %v4301_v55 }
 0x14d   :  { %2877 = vmatprep.subr.bf16.mxu0 %v5463_v46  ;;  %v148_v22 = vrot.slane %v127_v21, %v5512_v7 }
 0x14f   :  { %2715 = vmatpush1.bf16.msra.mxu1 %v4301_v55  ;;  %v5513_v55 = vsub.s32 1, %v5511_v35 }
 0x150   :  { %2717 = vmatprep.subr.bf16.mxu1 %v5463_v46  ;;  %2879 = vmatpush1.bf16.msra.mxu0 %v5466_v42 }
 0x151   :  { %2881 = vmatprep.subr.bf16.mxu0 %v5467_v39  ;;  %v152_v37 = vrot.slane %v127_v21, %v5513_v55 }
 0x153   :  { %2719 = vmatpush1.bf16.msra.mxu1 %v5466_v42 }
 0x154   :  { %2721 = vmatprep.subr.bf16.mxu1 %v5467_v39  ;;  %2883 = vmatpush1.bf16.msra.mxu0 %v5470_v31 }
 0x155   :  { %2885 = vmatprep.subr.bf16.mxu0 %v5471_v47 }
 0x157   :  { %2723 = vmatpush1.bf16.msra.mxu1 %v5470_v31 }
 0x158   :  { %2725 = vmatprep.subr.bf16.mxu1 %v5471_v47  ;;  %2887 = vmatpush1.bf16.msra.mxu0 %v5474_v49 }
 0x159   :  { %2889 = vmatprep.subr.bf16.mxu0 %v5475_v0 }
 0x15b   :  { %2727 = vmatpush1.bf16.msra.mxu1 %v5474_v49 }
 0x15c   :  { %2729 = vmatprep.subr.bf16.mxu1 %v5475_v0  ;;  %2891 = vmatpush1.bf16.msra.mxu0 %v5478_v33 }
 0x15f   :  { %2731 = vmatpush1.bf16.msra.mxu1 %v5478_v33  ;;  %2288 = vmatmul.mubr.f32.vlgmr.msra.gmra.mrb[2].mxu0 %v4453_v10 }
 0x162   :  { %1541 = vmatmul.mubr.f32.vlgmr.msra.gmra.mrb[2].mxu1 %v1540_v43 }
 0x183   :  { %v1434_v1 = vpop.f32.mrb[0].mxu0 }
 0x184   :  { %v1436_v18 = vpop.f32.mrb[1].mxu0 }
 0x215   :  { %v1032_v36 = vpop.f32.mrb[0].mxu1 }
 0x216   :  { %v2892_v12 = vadd.f32 %v1032_v36, %v148_v22  ;;  %v1034_v25 = vpop.f32.mrb[1].mxu1 }
 0x217   :  { %v2896_v26 = vadd.f32 %v1034_v25, %v152_v37 }
 0x218   :  { %v2893_v2 = vadd.f32 %v2892_v12, %v1434_v1 }
 0x219   :  { %v2897_v15 = vadd.f32 %v2896_v26, %v1436_v18 }
 0x232   :  { %v2289_v10 = vpop.f32.mrb[2].mxu0 }
 0x233   :  { %v2291_v46 = vpop.f32.mrb[3].mxu0 }
 0x235   :  { %v1542_v23 = vpop.f32.mrb[2].mxu1 }
 0x236   :  { %v2894_v40 = vadd.f32 %v2893_v2, %v1542_v23  ;;  %v1544_v42 = vpop.f32.mrb[3].mxu1 }
 0x237   :  { %v2898_v39 = vadd.f32 %v2897_v15, %v1544_v42 }
 0x238   :  { %v2895_v5 = vadd.f32 %v2894_v40, %v2289_v10 }
 0x239   :  { %v2899_v28 = vadd.f32 %v2898_v39, %v2291_v46 }
 0x23a   :  { %2920 = vtanh.f32 %v2895_v5 }
 0x23b   :  { %v2315_v31 = vmul.f32 -1.442695, %v2899_v28 }
 0x23d   :  { %2922 = vpow2.f32 %v2315_v31 }
 0x244   :  { %v2921_v47 = vpop.eup %2920 }
 0x245   :  { %2295 = vst [vmem:[%s4659_s3] sm:$0x1] %v2921_v47 }
 0x247   :  { %v2923_v27 = vpop.eup %2922 }
 0x248   :  { %v2299_v34 = vadd.f32 1.0, %v2923_v27 }
 0x24a   :  { %2924 = vrcp.f32 %v2299_v34 }
 0x254   :  { %v2925_v49 = vpop.eup %2924 }
 0x255   :  { %v2302_v0 = vmul.f32 1.442695, %v2925_v49 }
 0x257   :  { %2926 = vpow2.f32 %v2302_v0 }
 0x261   :  { %v2927_v50 = vpop.eup %2926 }
 0x262   :  { %v2304_v20 = vmul.f32 0.18393973, %v2927_v50 }
 0x264   :  { %2305 = vst [vmem:[%s4660_s4] sm:$0x1] %v2304_v20 }
 0x265   :  { %2314 = vsyncpa [#allocation3], 1 }

</bundles_post_ra>
